<compile_context>
chip_gen: v7x
topology: tpu7x:2x2x1
jax: 0.10.0
libtpu: 0.0.40
codegen_flags: <defaults>
</compile_context>

<pallas_src>
import functools
import math

import jax
import jax.numpy as jnp
from jax.experimental import pallas as pl
from jax.experimental.pallas import tpu as pltpu

_BN_EPS = 1e-5


# ----------------------------------------------------------------------------
# Generation-aware VMEM budgets and tile pickers
# ----------------------------------------------------------------------------
def _vmem_budgets():
    """(scoped vmem_limit_bytes, per-step tile working-set budget) per TPU generation."""
    kind = ""
    try:
        kind = jax.devices()[0].device_kind.lower()
    except Exception:
        pass
    if "v5" in kind or "v6" in kind:
        # 128 MiB physical VMEM: large tiles amortize per-grid-step overhead and push
        # the mem-bound streams toward HBM roofline.
        return 100 * 1024 * 1024, 44 * 1024 * 1024
    # v7x (64 MiB physical VMEM) or unknown backend: pessimistic budget that already
    # pays for double-buffered blocks, weight buffers and score intermediates.
    return 48 * 1024 * 1024, 14 * 1024 * 1024


def _pick_batch_tile(B, N, D, H, budget):
    """Largest Bt dividing B whose MHA working set fits the budget; capped at B//2 so the
    grid has >=2 steps (pipelining + both v7x TensorCores)."""
    # Pessimistic f32-equivalent bytes per batch element: double-buffered bf16 in/out/mask
    # blocks, f32 qkv + head-major copies, ~4 live (H,N,N) f32 score-path arrays.
    per_b = 64 * N * D + N * N * (4 + 18 * H)
    weights = 16 * D * D          # bf16 wqkv + wo, double-buffered
    avail = max(budget - weights, per_b)
    bt_max = max(1, int(avail // per_b))
    bt_max = min(bt_max, max(1, B // 2), B)
    for bt in range(bt_max, 0, -1):
        if B % bt == 0:
            return bt
    return 1


def _pick_row_tile(M, D, F, budget):
    """Largest row tile (multiple of 8, dividing M) fitting the budget, capped at M//4."""
    per_row = 28 * D + 10 * F + 64
    weights = 8 * D * F + 16 * (D + F)     # bf16 w1/w2 double-buffered + biases
    avail = max(budget - weights, 8 * per_row)
    tmax = max(8, int(avail // per_row))
    tmax = min(tmax, max(8, M // 4))       # keep >=4 grid steps when possible
    for t in (16384, 8192, 4096, 2048, 1024, 512, 256, 128, 64, 32, 16, 8):
        if t <= tmax and t <= M and M % t == 0:
            return t
    for t in range(min(M, tmax), 7, -1):   # fallback: any multiple-of-8 divisor
        if M % t == 0 and t % 8 == 0:
            return t
    return M                               # last resort: whole array (still a valid block)


# ----------------------------------------------------------------------------
# Kernel A: folded previous BatchNorm + multi-head attention + residual
#           + partial BatchNorm statistics for the following norm
# ----------------------------------------------------------------------------
def _mha_kernel(h_ref, bias_ref, scale_ref, shift_ref, wqkv_ref, wo_ref,
                out_ref, stats_ref, *, n_heads, dk):
    Bt, N, D = h_ref.shape
    H = n_heads

    # Folded BatchNorm of the previous sub-layer (identity for layer 0). Elementwise
    # math in f32 (v5e VPU/EUP have no bf16); only MXU operands are cast to bf16.
    hn = h_ref[...].astype(jnp.float32) * scale_ref[...] + shift_ref[...]     # (Bt,N,D)

    # Fused Q/K/V projection: one (Bt*N, D) @ (D, 3*H*dk) bf16 matmul, f32 accumulate.
    flat = hn.astype(jnp.bfloat16).reshape(Bt * N, D)
    qkv = jnp.dot(flat, wqkv_ref[...], preferred_element_type=jnp.float32)
    # Head-major relayout ONCE (instead of per-head lane slices + lane concat):
    #   (Bt*N, 3*H*dk) -> (Bt, N, 3H, dk) -> (Bt, 3H, N, dk)
    qkv = jnp.transpose(qkv.reshape(Bt, N, 3 * H, dk), (0, 2, 1, 3))
    q = qkv[:, :H].reshape(Bt * H, N, dk).astype(jnp.bfloat16)   # 1/sqrt(dk) folded in Wq
    k = qkv[:, H:2 * H].reshape(Bt * H, N, dk).astype(jnp.bfloat16)
    v = qkv[:, 2 * H:].reshape(Bt * H, N, dk).astype(jnp.bfloat16)

    # Scores batched over (Bt*H) on the MXU; additive mask bias (~ -1e10 on blocked edges).
    s = jnp.einsum('bqd,bkd->bqk', q, k, preferred_element_type=jnp.float32)
    s = s.reshape(Bt, H, N, N) + bias_ref[...].astype(jnp.float32)[:, None, :, :]

    # Exact softmax in f32 (no approx reciprocal — closer parity with the PyTorch module).
    m = jnp.max(s, axis=-1, keepdims=True)
    e = jnp.exp(s - m)
    p = e / jnp.sum(e, axis=-1, keepdims=True)

    o = jnp.einsum('bqk,bkd->bqd',
                   p.reshape(Bt * H, N, N).astype(jnp.bfloat16), v,
                   preferred_element_type=jnp.float32)                        # (Bt*H,N,dk)
    heads = jnp.transpose(o.reshape(Bt, H, N, dk), (0, 2, 1, 3)).reshape(Bt * N, H * dk)
    proj = jnp.dot(heads.astype(jnp.bfloat16), wo_ref[...],
                   preferred_element_type=jnp.float32)
    h1 = hn + proj.reshape(Bt, N, D)                                          # SkipConnection
    out_ref[...] = h1.astype(out_ref.dtype)                                   # bf16 to HBM

    # Partial BatchNorm statistics: per-tile sum and *centered* sum-of-squares
    # (combined host-side with Chan's parallel formula).
    f1 = h1.reshape(Bt * N, D)
    s1 = jnp.sum(f1, axis=0, keepdims=True)
    mu = s1 * jnp.float32(1.0 / (Bt * N))
    c = f1 - mu
    m2 = jnp.sum(c * c, axis=0, keepdims=True)
    stats_ref[...] = jnp.concatenate([s1, m2], axis=0).reshape(1, 2, D)


def mha_prenorm_residual(h, bias, scale, shift, wqkv, wo_cat, n_heads):
    B, N, D = h.shape
    dk = D // n_heads
    vmem_limit, tile_budget = _vmem_budgets()
    Bt = _pick_batch_tile(B, N, D, n_heads, tile_budget)
    nb = B // Bt
    kernel = functools.partial(_mha_kernel, n_heads=n_heads, dk=dk)
    M = B * N
    flops = 8 * M * D * D + 4 * B * N * N * D
    trans = B * n_heads * N * N
    bytes_acc = 4 * M * D + 2 * B * N * N + 8 * D * D + 4 * (2 * nb * D + 4 * D)
    return pl.pallas_call(
        kernel,
        out_shape=(jax.ShapeDtypeStruct((B, N, D), jnp.bfloat16),
                   jax.ShapeDtypeStruct((nb, 2, D), jnp.float32)),
        grid=(nb,),
        in_specs=[
            pl.BlockSpec((Bt, N, D), lambda b: (b, 0, 0)),
            pl.BlockSpec((Bt, N, N), lambda b: (b, 0, 0)),
            pl.BlockSpec((1, D), lambda b: (0, 0)),
            pl.BlockSpec((1, D), lambda b: (0, 0)),
            pl.BlockSpec((D, 3 * D), lambda b: (0, 0)),
            pl.BlockSpec((D, D), lambda b: (0, 0)),
        ],
        out_specs=(pl.BlockSpec((Bt, N, D), lambda b: (b, 0, 0)),
                   pl.BlockSpec((1, 2, D), lambda b: (b, 0, 0))),
        compiler_params=pltpu.CompilerParams(
            dimension_semantics=("parallel",),
            vmem_limit_bytes=vmem_limit),
        cost_estimate=pl.CostEstimate(flops=flops, transcendentals=trans,
                                      bytes_accessed=bytes_acc),
    )(h, bias, scale, shift, wqkv, wo_cat)


# ----------------------------------------------------------------------------
# Kernel B: folded BN1 + position-wise FFN + residual + partial BN2 statistics
# ----------------------------------------------------------------------------
def _ffn_kernel(x_ref, scale_ref, shift_ref, w1_ref, b1_ref, w2_ref, b2_ref,
                out_ref, stats_ref):
    TM, D = x_ref.shape
    xn = x_ref[...].astype(jnp.float32) * scale_ref[...] + shift_ref[...]     # BN1
    z = jnp.dot(xn.astype(jnp.bfloat16), w1_ref[...],
                preferred_element_type=jnp.float32) + b1_ref[...]
    z = jnp.maximum(z, jnp.float32(0.0))
    y = xn + jnp.dot(z.astype(jnp.bfloat16), w2_ref[...],
                     preferred_element_type=jnp.float32) + b2_ref[...]
    out_ref[...] = y.astype(out_ref.dtype)                                    # bf16 to HBM
    s1 = jnp.sum(y, axis=0, keepdims=True)
    mu = s1 * jnp.float32(1.0 / TM)
    c = y - mu
    m2 = jnp.sum(c * c, axis=0, keepdims=True)
    stats_ref[...] = jnp.concatenate([s1, m2], axis=0).reshape(1, 2, D)


def ffn_prenorm_residual(x2d, scale, shift, w1, b1, w2, b2):
    M, D = x2d.shape
    F = w1.shape[1]
    vmem_limit, tile_budget = _vmem_budgets()
    TM = _pick_row_tile(M, D, F, tile_budget)
    nm = M // TM
    flops = 4 * M * D * F
    bytes_acc = 4 * M * D + 4 * D * F + 4 * (F + 5 * D) + 8 * nm * D
    return pl.pallas_call(
        _ffn_kernel,
        out_shape=(jax.ShapeDtypeStruct((M, D), jnp.bfloat16),
                   jax.ShapeDtypeStruct((nm, 2, D), jnp.float32)),
        grid=(nm,),
        in_specs=[
            pl.BlockSpec((TM, D), lambda i: (i, 0)),
            pl.BlockSpec((1, D), lambda i: (0, 0)),
            pl.BlockSpec((1, D), lambda i: (0, 0)),
            pl.BlockSpec((D, F), lambda i: (0, 0)),
            pl.BlockSpec((1, F), lambda i: (0, 0)),
            pl.BlockSpec((F, D), lambda i: (0, 0)),
            pl.BlockSpec((1, D), lambda i: (0, 0)),
        ],
        out_specs=(pl.BlockSpec((TM, D), lambda i: (i, 0)),
                   pl.BlockSpec((1, 2, D), lambda i: (i, 0, 0))),   # <-- 3 indices (fix)
        compiler_params=pltpu.CompilerParams(
            dimension_semantics=("parallel",),
            vmem_limit_bytes=vmem_limit),
        cost_estimate=pl.CostEstimate(flops=flops, transcendentals=0,
                                      bytes_accessed=bytes_acc),
    )(x2d, scale, shift, w1, b1.reshape(1, F).astype(jnp.float32),
      w2, b2.reshape(1, D).astype(jnp.float32))


# ----------------------------------------------------------------------------
# Kernel C: final BatchNorm applied as a tiled affine (x*scale + shift), f32 out
# ----------------------------------------------------------------------------
def _affine_kernel(x_ref, scale_ref, shift_ref, out_ref):
    out_ref[...] = x_ref[...].astype(jnp.float32) * scale_ref[...] + shift_ref[...]


def apply_affine(x2d, scale, shift):
    M, D = x2d.shape
    vmem_limit, tile_budget = _vmem_budgets()
    TM = _pick_row_tile(M, D, 0, tile_budget)
    nm = M // TM
    return pl.pallas_call(
        _affine_kernel,
        out_shape=jax.ShapeDtypeStruct((M, D), jnp.float32),
        grid=(nm,),
        in_specs=[pl.BlockSpec((TM, D), lambda i: (i, 0)),
                  pl.BlockSpec((1, D), lambda i: (0, 0)),
                  pl.BlockSpec((1, D), lambda i: (0, 0))],
        out_specs=pl.BlockSpec((TM, D), lambda i: (i, 0)),
        compiler_params=pltpu.CompilerParams(
            dimension_semantics=("parallel",),
            vmem_limit_bytes=vmem_limit),
        cost_estimate=pl.CostEstimate(flops=2 * M * D, transcendentals=0,
                                      bytes_accessed=6 * M * D + 8 * D),
    )(x2d, scale, shift)


# ----------------------------------------------------------------------------
# Host-side glue: BN stats reduction (Chan's parallel formula) and weight fusion
# ----------------------------------------------------------------------------
def _bn_affine_from_stats(partial_stats, count, gamma, beta, eps=_BN_EPS):
    nb = partial_stats.shape[0]
    n_t = count // nb                                  # rows per tile (tiles divide exactly)
    sums = partial_stats[:, 0, :]                      # (nb, D) per-tile sums
    m2s = partial_stats[:, 1, :]                       # (nb, D) per-tile centered SSQ
    mean_t = sums / jnp.float32(n_t)
    mean = jnp.sum(sums, axis=0) / jnp.float32(count)
    m2 = jnp.sum(m2s, axis=0) + jnp.float32(n_t) * jnp.sum((mean_t - mean) ** 2, axis=0)
    var = jnp.maximum(m2 / jnp.float32(count), 0.0)    # biased variance (BatchNorm training)
    inv = jax.lax.rsqrt(var + eps)
    scale = gamma * inv
    shift = beta - mean * scale
    D = gamma.shape[-1]
    return (scale.reshape(1, D).astype(jnp.float32),
            shift.reshape(1, D).astype(jnp.float32))


def _fuse_qkv_weights(wq, wk, wv, norm_factor):
    H, D, dk = wq.shape

    def flat(w):  # (H, D, dk) -> (D, H*dk), head-major columns
        return jnp.transpose(w, (1, 0, 2)).reshape(D, H * dk)

    # Fold 1/sqrt(dk) into the Q columns; store bf16 for the MXU.
    return jnp.concatenate([flat(wq) * jnp.float32(norm_factor), flat(wk), flat(wv)],
                           axis=1).astype(jnp.bfloat16)


def graph_attention_encoder(x, graph_mask, params, n_heads):
    B, N, D = x.shape
    M = B * N
    dk = D // n_heads
    # Additive attention-mask bias, computed ONCE for all layers, stored bf16 (halves the
    # dominant (B,N,N) HBM stream vs re-reading an f32 {0,1} mask every layer).
    bias = (graph_mask * jnp.float32(-1e10)).astype(jnp.bfloat16)
    h = x.astype(jnp.bfloat16)                  # inter-kernel activations kept bf16
    scale = jnp.ones((1, D), jnp.float32)       # identity "previous norm" for layer 0
    shift = jnp.zeros((1, D), jnp.float32)
    for layer in params:
        wqkv = _fuse_qkv_weights(layer["wq"], layer["wk"], layer["wv"],
                                 1.0 / math.sqrt(dk))
        wo_cat = layer["wo"].reshape(-1, D).astype(jnp.bfloat16)
        h, st1 = mha_prenorm_residual(h, bias, scale, shift, wqkv, wo_cat, n_heads)
        scale, shift = _bn_affine_from_stats(st1, M, layer["bn1_g"], layer["bn1_b"])
        h2, st2 = ffn_prenorm_residual(h.reshape(M, D), scale, shift,
                                       layer["w1"].astype(jnp.bfloat16), layer["b1"],
                                       layer["w2"].astype(jnp.bfloat16), layer["b2"])
        h = h2.reshape(B, N, D)
        scale, shift = _bn_affine_from_stats(st2, M, layer["bn2_g"], layer["bn2_b"])
    return apply_affine(h.reshape(M, D), scale, shift).reshape(B, N, D)


# ----------------------------------------------------------------------------
# Parameter init (mirrors uniform(-1/sqrt(last_dim), +1/sqrt(last_dim)))
# ----------------------------------------------------------------------------
def init_params(key, n_layers, n_heads, hidden_dim):
    dk = hidden_dim // n_heads
    ff_dim = hidden_dim * 4

    def unif(k, shape, stdv):
        return jax.random.uniform(k, shape, jnp.float32, -stdv, stdv)

    params = []
    for _ in range(n_layers):
        keys = jax.random.split(key, 9)
        key = keys[0]
        params.append(dict(
            wq=unif(keys[1], (n_heads, hidden_dim, dk), 1.0 / math.sqrt(dk)),
            wk=unif(keys[2], (n_heads, hidden_dim, dk), 1.0 / math.sqrt(dk)),
            wv=unif(keys[3], (n_heads, hidden_dim, dk), 1.0 / math.sqrt(dk)),
            wo=unif(keys[4], (n_heads, dk, hidden_dim), 1.0 / math.sqrt(hidden_dim)),
            bn1_g=jnp.ones((hidden_dim,), jnp.float32),
            bn1_b=jnp.zeros((hidden_dim,), jnp.float32),
            w1=unif(keys[5], (hidden_dim, ff_dim), 1.0 / math.sqrt(hidden_dim)),
            b1=unif(keys[6], (ff_dim,), 1.0 / math.sqrt(ff_dim)),
            w2=unif(keys[7], (ff_dim, hidden_dim), 1.0 / math.sqrt(ff_dim)),
            b2=unif(keys[8], (hidden_dim,), 1.0 / math.sqrt(hidden_dim)),
            bn2_g=jnp.ones((hidden_dim,), jnp.float32),
            bn2_b=jnp.zeros((hidden_dim,), jnp.float32),
        ))
    return params


# ----------------------------------------------------------------------------
# Pure-JAX f32 reference (mirrors the PyTorch forward) for a self-check
# ----------------------------------------------------------------------------
def _bn_ref(h, gamma, beta, eps=_BN_EPS):
    B, N, D = h.shape
    x = h.reshape(B * N, D)
    mean = jnp.mean(x, axis=0, keepdims=True)
    var = jnp.mean((x - mean) ** 2, axis=0, keepdims=True)
    y = (x - mean) * jax.lax.rsqrt(var + eps) * gamma + beta
    return y.reshape(B, N, D)


def _reference_forward(x, mask, params):
    B, N, D = x.shape
    h = x
    for layer in params:
        wq, wk, wv, wo = layer["wq"], layer["wk"], layer["wv"], layer["wo"]
        H, _, dk = wq.shape
        flat = h.reshape(B * N, D)
        Q = jnp.einsum('nd,hdk->hnk', flat, wq).reshape(H, B, N, dk)
        K = jnp.einsum('nd,hdk->hnk', flat, wk).reshape(H, B, N, dk)
        V = jnp.einsum('nd,hdk->hnk', flat, wv).reshape(H, B, N, dk)
        comp = (1.0 / math.sqrt(dk)) * jnp.einsum('hbqd,hbkd->hbqk', Q, K)
        comp = jnp.where(mask[None] > 0.5, -1e10, comp)
        attn = jax.nn.softmax(comp, axis=-1)
        heads = jnp.einsum('hbqk,hbkd->hbqd', attn, V)
        heads = jnp.transpose(heads, (1, 2, 0, 3)).reshape(B * N, H * dk)
        h = h + (heads @ wo.reshape(H * dk, D)).reshape(B, N, D)
        h = _bn_ref(h, layer["bn1_g"], layer["bn1_b"])
        f = h.reshape(B * N, D)
        z = jnp.maximum(f @ layer["w1"] + layer["b1"], 0.0)
        h = h + (z @ layer["w2"] + layer["b2"]).reshape(B, N, D)
        h = _bn_ref(h, layer["bn2_g"], layer["bn2_b"])
    return h


if __name__ == "__main__":
    n_layers, n_heads, hidden_dim = 2, 4, 32
    B, N = 2, 8

    root = jax.random.PRNGKey(0)
    k_x, k_g, k_p = jax.random.split(root, 3)

    x = jax.random.normal(k_x, (B, N, hidden_dim), jnp.float32)

    # Random graph mask: 1.0 = attention blocked (non-edge), diagonal always allowed.
    raw = (jax.random.uniform(k_g, (B, N, N)) < 0.3).astype(jnp.float32)
    graph = raw * (1.0 - jnp.eye(N, dtype=jnp.float32)[None, :, :])

    params = init_params(k_p, n_layers, n_heads, hidden_dim)

    fwd = jax.jit(graph_attention_encoder, static_argnames=("n_heads",))
    out = jax.block_until_ready(fwd(x, graph, params, n_heads=n_heads))

    assert out.shape == (B, N, hidden_dim)
    assert out.dtype == jnp.float32
    assert bool(jnp.all(jnp.isfinite(out)))

    ref = _reference_forward(x, graph, params)
    err = float(jnp.max(jnp.abs(out - ref)))
    # Loose tolerance: bf16 MXU operands + bf16 inter-kernel activations vs f32 reference.
    tol = 6e-2 * (float(jnp.max(jnp.abs(ref))) + 1.0)
    assert err <= tol, f"mismatch vs reference: {err} > {tol}"

    print("KERNEL_OK")
</pallas_src>

<mosaic_0001>
module attributes {stable_mosaic.version = 11 : i64} {
  func.func @_mha_kernel(%arg0: i32, %arg1: memref<1x8x32xbf16, #tpu.memory_space<vmem>>, %arg2: memref<1x8x8xbf16, #tpu.memory_space<vmem>>, %arg3: memref<1x32xf32, #tpu.memory_space<vmem>>, %arg4: memref<1x32xf32, #tpu.memory_space<vmem>>, %arg5: memref<32x96xbf16, #tpu.memory_space<vmem>>, %arg6: memref<32x32xbf16, #tpu.memory_space<vmem>>, %arg7: memref<1x8x32xbf16, #tpu.memory_space<vmem>>, %arg8: memref<1x2x32xf32, #tpu.memory_space<vmem>>) attributes {dimension_semantics = [#tpu.dimension_semantics<parallel>], iteration_bounds = array<i64: 2>, scalar_prefetch = 0 : i64, scratch_operands = 0 : i64, tpu.core_type = #tpu.core_type<tc>, window_params = [{transform_indices = @transform_0, window_bounds = array<i64: 1, 8, 32>}, {transform_indices = @transform_1, window_bounds = array<i64: 1, 8, 8>}, {pipeline_mode = #tpu.pipeline_mode<synchronous>, transform_indices = @transform_2, window_bounds = array<i64: 1, 32>}, {pipeline_mode = #tpu.pipeline_mode<synchronous>, transform_indices = @transform_3, window_bounds = array<i64: 1, 32>}, {pipeline_mode = #tpu.pipeline_mode<synchronous>, transform_indices = @transform_4, window_bounds = array<i64: 32, 96>}, {pipeline_mode = #tpu.pipeline_mode<synchronous>, transform_indices = @transform_5, window_bounds = array<i64: 32, 32>}, {transform_indices = @transform_6, window_bounds = array<i64: 1, 8, 32>}, {transform_indices = @transform_7, window_bounds = array<i64: 1, 2, 32>}]} {
    %c0 = arith.constant 0 : index
    %c0_0 = arith.constant 0 : index
    %c0_1 = arith.constant 0 : index
    %0 = vector.load %arg1[%c0, %c0_0, %c0_1] : memref<1x8x32xbf16, #tpu.memory_space<vmem>>, vector<1x8x32xbf16>
    %1 = arith.extf %0 : vector<1x8x32xbf16> to vector<1x8x32xf32>
    %c0_2 = arith.constant 0 : index
    %c0_3 = arith.constant 0 : index
    %2 = vector.load %arg3[%c0_2, %c0_3] : memref<1x32xf32, #tpu.memory_space<vmem>>, vector<1x32xf32>
    %3 = vector.shape_cast %2 : vector<1x32xf32> to vector<1x1x32xf32>
    %4 = vector.broadcast %3 : vector<1x1x32xf32> to vector<1x8x32xf32>
    %5 = arith.mulf %1, %4 : vector<1x8x32xf32>
    %c0_4 = arith.constant 0 : index
    %c0_5 = arith.constant 0 : index
    %6 = vector.load %arg4[%c0_4, %c0_5] : memref<1x32xf32, #tpu.memory_space<vmem>>, vector<1x32xf32>
    %7 = vector.shape_cast %6 : vector<1x32xf32> to vector<1x1x32xf32>
    %8 = vector.broadcast %7 : vector<1x1x32xf32> to vector<1x8x32xf32>
    %9 = arith.addf %5, %8 : vector<1x8x32xf32>
    %10 = arith.truncf %9 : vector<1x8x32xf32> to vector<1x8x32xbf16>
    %11 = vector.shape_cast %10 : vector<1x8x32xbf16> to vector<8x32xbf16>
    %c0_6 = arith.constant 0 : index
    %c0_7 = arith.constant 0 : index
    %12 = vector.load %arg5[%c0_6, %c0_7] : memref<32x96xbf16, #tpu.memory_space<vmem>>, vector<32x96xbf16>
    %cst = arith.constant dense<0.000000e+00> : vector<8x96xf32>
    %13 = tpu.matmul %11, %12, %cst {dimension_numbers = #tpu.dot_dimension_numbers<[1], [0], [0], [1], [0, 0, 1, 1], [], []>} : vector<8x32xbf16>, vector<32x96xbf16>, vector<8x96xf32> -> vector<8x96xf32>
    %14 = vector.shape_cast %13 : vector<8x96xf32> to vector<1x8x12x8xf32>
    %15 = tpu.transpose %14, [0, 2, 1, 3] : vector<1x8x12x8xf32> -> vector<1x12x8x8xf32>
    %16 = vector.extract_strided_slice %15 {offsets = [0, 0, 0, 0], sizes = [1, 4, 8, 8], strides = [1, 1, 1, 1]} : vector<1x12x8x8xf32> to vector<1x4x8x8xf32>
    %17 = vector.shape_cast %16 : vector<1x4x8x8xf32> to vector<4x8x8xf32>
    %18 = arith.truncf %17 : vector<4x8x8xf32> to vector<4x8x8xbf16>
    %19 = vector.extract_strided_slice %15 {offsets = [0, 4, 0, 0], sizes = [1, 4, 8, 8], strides = [1, 1, 1, 1]} : vector<1x12x8x8xf32> to vector<1x4x8x8xf32>
    %20 = vector.shape_cast %19 : vector<1x4x8x8xf32> to vector<4x8x8xf32>
    %21 = arith.truncf %20 : vector<4x8x8xf32> to vector<4x8x8xbf16>
    %22 = vector.extract_strided_slice %15 {offsets = [0, 8, 0, 0], sizes = [1, 4, 8, 8], strides = [1, 1, 1, 1]} : vector<1x12x8x8xf32> to vector<1x4x8x8xf32>
    %23 = vector.shape_cast %22 : vector<1x4x8x8xf32> to vector<4x8x8xf32>
    %24 = arith.truncf %23 : vector<4x8x8xf32> to vector<4x8x8xbf16>
    "tpu.trace_start"() <{level = 10 : i32, message = "bqd,bkd->bqk"}> : () -> ()
    %cst_8 = arith.constant dense<0.000000e+00> : vector<4x8x8xf32>
    %25 = tpu.matmul %18, %21, %cst_8 {dimension_numbers = #tpu.dot_dimension_numbers<[2], [2], [1], [1], [0, 0, 0, 1, 1, 1], [0], [0]>} : vector<4x8x8xbf16>, vector<4x8x8xbf16>, vector<4x8x8xf32> -> vector<4x8x8xf32>
    "tpu.trace_stop"() : () -> ()
    %26 = vector.shape_cast %25 : vector<4x8x8xf32> to vector<1x4x8x8xf32>
    %c0_9 = arith.constant 0 : index
    %c0_10 = arith.constant 0 : index
    %c0_11 = arith.constant 0 : index
    %27 = vector.load %arg2[%c0_9, %c0_10, %c0_11] : memref<1x8x8xbf16, #tpu.memory_space<vmem>>, vector<1x8x8xbf16>
    %28 = arith.extf %27 : vector<1x8x8xbf16> to vector<1x8x8xf32>
    %29 = vector.shape_cast %28 : vector<1x8x8xf32> to vector<1x1x8x8xf32>
    %30 = vector.broadcast %29 : vector<1x1x8x8xf32> to vector<1x4x8x8xf32>
    %31 = arith.addf %26, %30 : vector<1x4x8x8xf32>
    %cst_12 = arith.constant dense<0xFF800000> : vector<1x4x8xf32>
    %32 = vector.multi_reduction <maximumf>, %31, %cst_12 [3] : vector<1x4x8x8xf32> to vector<1x4x8xf32>
    %33 = vector.shape_cast %32 : vector<1x4x8xf32> to vector<1x4x8x1xf32>
    %34 = vector.broadcast %33 : vector<1x4x8x1xf32> to vector<1x4x8x8xf32>
    %35 = arith.subf %31, %34 : vector<1x4x8x8xf32>
    %36 = math.exp %35 : vector<1x4x8x8xf32>
    %cst_13 = arith.constant dense<0.000000e+00> : vector<1x4x8xf32>
    %37 = vector.multi_reduction <add>, %36, %cst_13 [3] : vector<1x4x8x8xf32> to vector<1x4x8xf32>
    %38 = vector.shape_cast %37 : vector<1x4x8xf32> to vector<1x4x8x1xf32>
    %39 = vector.broadcast %38 : vector<1x4x8x1xf32> to vector<1x4x8x8xf32>
    %40 = arith.divf %36, %39 : vector<1x4x8x8xf32>
    %41 = vector.shape_cast %40 : vector<1x4x8x8xf32> to vector<4x8x8xf32>
    %42 = arith.truncf %41 : vector<4x8x8xf32> to vector<4x8x8xbf16>
    "tpu.trace_start"() <{level = 10 : i32, message = "bqk,bkd->bqd"}> : () -> ()
    %cst_14 = arith.constant dense<0.000000e+00> : vector<4x8x8xf32>
    %43 = tpu.matmul %42, %24, %cst_14 {dimension_numbers = #tpu.dot_dimension_numbers<[2], [1], [1], [2], [0, 0, 0, 1, 1, 2], [0], [0]>} : vector<4x8x8xbf16>, vector<4x8x8xbf16>, vector<4x8x8xf32> -> vector<4x8x8xf32>
    "tpu.trace_stop"() : () -> ()
    %44 = vector.shape_cast %43 : vector<4x8x8xf32> to vector<1x4x8x8xf32>
    %45 = tpu.transpose %44, [0, 2, 1, 3] : vector<1x4x8x8xf32> -> vector<1x8x4x8xf32>
    %46 = vector.shape_cast %45 : vector<1x8x4x8xf32> to vector<8x32xf32>
    %47 = arith.truncf %46 : vector<8x32xf32> to vector<8x32xbf16>
    %c0_15 = arith.constant 0 : index
    %c0_16 = arith.constant 0 : index
    %48 = vector.load %arg6[%c0_15, %c0_16] : memref<32x32xbf16, #tpu.memory_space<vmem>>, vector<32x32xbf16>
    %cst_17 = arith.constant dense<0.000000e+00> : vector<8x32xf32>
    %49 = tpu.matmul %47, %48, %cst_17 {dimension_numbers = #tpu.dot_dimension_numbers<[1], [0], [0], [1], [0, 0, 1, 1], [], []>} : vector<8x32xbf16>, vector<32x32xbf16>, vector<8x32xf32> -> vector<8x32xf32>
    %50 = vector.shape_cast %49 : vector<8x32xf32> to vector<1x8x32xf32>
    %51 = arith.addf %9, %50 : vector<1x8x32xf32>
    %52 = arith.truncf %51 : vector<1x8x32xf32> to vector<1x8x32xbf16>
    %c0_18 = arith.constant 0 : index
    %c0_19 = arith.constant 0 : index
    %c0_20 = arith.constant 0 : index
    %53 = vector.load %arg7[%c0_18, %c0_19, %c0_20] : memref<1x8x32xbf16, #tpu.memory_space<vmem>>, vector<1x8x32xbf16>
    tpu.vector_store %arg7[%c0_18, %c0_19, %c0_20], %52 {strides = array<i32>} : memref<1x8x32xbf16, #tpu.memory_space<vmem>>, vector<1x8x32xbf16>,
    %54 = vector.shape_cast %51 : vector<1x8x32xf32> to vector<8x32xf32>
    %cst_21 = arith.constant dense<0.000000e+00> : vector<32xf32>
    %55 = vector.multi_reduction <add>, %54, %cst_21 [0] : vector<8x32xf32> to vector<32xf32>
    %56 = vector.shape_cast %55 : vector<32xf32> to vector<1x32xf32>
    %cst_22 = arith.constant 1.250000e-01 : f32
    %57 = vector.broadcast %cst_22 : f32 to vector<1x32xf32>
    %58 = arith.mulf %56, %57 : vector<1x32xf32>
    %59 = vector.broadcast %58 : vector<1x32xf32> to vector<8x32xf32>
    %60 = arith.subf %54, %59 : vector<8x32xf32>
    %61 = arith.mulf %60, %60 : vector<8x32xf32>
    %cst_23 = arith.constant dense<0.000000e+00> : vector<32xf32>
    %62 = vector.multi_reduction <add>, %61, %cst_23 [0] : vector<8x32xf32> to vector<32xf32>
    %63 = vector.shape_cast %62 : vector<32xf32> to vector<1x32xf32>
    %64 = tpu.concatenate %56, %63 in 0 : vector<1x32xf32>, vector<1x32xf32> -> vector<2x32xf32>
    %65 = vector.shape_cast %64 : vector<2x32xf32> to vector<1x2x32xf32>
    %c0_24 = arith.constant 0 : index
    %c0_25 = arith.constant 0 : index
    %c0_26 = arith.constant 0 : index
    %66 = vector.load %arg8[%c0_24, %c0_25, %c0_26] : memref<1x2x32xf32, #tpu.memory_space<vmem>>, vector<1x2x32xf32>
    tpu.vector_store %arg8[%c0_24, %c0_25, %c0_26], %65 {strides = array<i32>} : memref<1x2x32xf32, #tpu.memory_space<vmem>>, vector<1x2x32xf32>,
    return
  }
  func.func @transform_0(%arg0: i32) -> (i32, i32, i32) {
    %c0_i32 = arith.constant 0 : i32
    %c0_i32_0 = arith.constant 0 : i32
    %c0_i32_1 = arith.constant 0 : i32
    return %arg0, %c0_i32, %c0_i32_0 : i32, i32, i32
  }
  func.func @transform_1(%arg0: i32) -> (i32, i32, i32) {
    %c0_i32 = arith.constant 0 : i32
    %c0_i32_0 = arith.constant 0 : i32
    %c0_i32_1 = arith.constant 0 : i32
    return %arg0, %c0_i32, %c0_i32_0 : i32, i32, i32
  }
  func.func @transform_2(%arg0: i32) -> (i32, i32) {
    %c0_i32 = arith.constant 0 : i32
    %c0_i32_0 = arith.constant 0 : i32
    %c0_i32_1 = arith.constant 0 : i32
    return %c0_i32, %c0_i32_0 : i32, i32
  }
  func.func @transform_3(%arg0: i32) -> (i32, i32) {
    %c0_i32 = arith.constant 0 : i32
    %c0_i32_0 = arith.constant 0 : i32
    %c0_i32_1 = arith.constant 0 : i32
    return %c0_i32, %c0_i32_0 : i32, i32
  }
  func.func @transform_4(%arg0: i32) -> (i32, i32) {
    %c0_i32 = arith.constant 0 : i32
    %c0_i32_0 = arith.constant 0 : i32
    %c0_i32_1 = arith.constant 0 : i32
    return %c0_i32, %c0_i32_0 : i32, i32
  }
  func.func @transform_5(%arg0: i32) -> (i32, i32) {
    %c0_i32 = arith.constant 0 : i32
    %c0_i32_0 = arith.constant 0 : i32
    %c0_i32_1 = arith.constant 0 : i32
    return %c0_i32, %c0_i32_0 : i32, i32
  }
  func.func @transform_6(%arg0: i32) -> (i32, i32, i32) {
    %c0_i32 = arith.constant 0 : i32
    %c0_i32_0 = arith.constant 0 : i32
    %c0_i32_1 = arith.constant 0 : i32
    return %arg0, %c0_i32, %c0_i32_0 : i32, i32, i32
  }
  func.func @transform_7(%arg0: i32) -> (i32, i32, i32) {
    %c0_i32 = arith.constant 0 : i32
    %c0_i32_0 = arith.constant 0 : i32
    %c0_i32_1 = arith.constant 0 : i32
    return %arg0, %c0_i32, %c0_i32_0 : i32, i32, i32
  }
}

module attributes {stable_mosaic.version = 11 : i64} {
  func.func @_affine_kernel(%arg0: i32, %arg1: memref<8x32xbf16, #tpu.memory_space<vmem>>, %arg2: memref<1x32xf32, #tpu.memory_space<vmem>>, %arg3: memref<1x32xf32, #tpu.memory_space<vmem>>, %arg4: memref<8x32xf32, #tpu.memory_space<vmem>>) attributes {dimension_semantics = [#tpu.dimension_semantics<parallel>], iteration_bounds = array<i64: 2>, scalar_prefetch = 0 : i64, scratch_operands = 0 : i64, tpu.core_type = #tpu.core_type<tc>, window_params = [{transform_indices = @transform_0, window_bounds = array<i64: 8, 32>}, {pipeline_mode = #tpu.pipeline_mode<synchronous>, transform_indices = @transform_1, window_bounds = array<i64: 1, 32>}, {pipeline_mode = #tpu.pipeline_mode<synchronous>, transform_indices = @transform_2, window_bounds = array<i64: 1, 32>}, {transform_indices = @transform_3, window_bounds = array<i64: 8, 32>}]} {
    %c0 = arith.constant 0 : index
    %c0_0 = arith.constant 0 : index
    %0 = vector.load %arg1[%c0, %c0_0] : memref<8x32xbf16, #tpu.memory_space<vmem>>, vector<8x32xbf16>
    %1 = arith.extf %0 : vector<8x32xbf16> to vector<8x32xf32>
    %c0_1 = arith.constant 0 : index
    %c0_2 = arith.constant 0 : index
    %2 = vector.load %arg2[%c0_1, %c0_2] : memref<1x32xf32, #tpu.memory_space<vmem>>, vector<1x32xf32>
    %3 = vector.broadcast %2 : vector<1x32xf32> to vector<8x32xf32>
    %4 = arith.mulf %1, %3 : vector<8x32xf32>
    %c0_3 = arith.constant 0 : index
    %c0_4 = arith.constant 0 : index
    %5 = vector.load %arg3[%c0_3, %c0_4] : memref<1x32xf32, #tpu.memory_space<vmem>>, vector<1x32xf32>
    %6 = vector.broadcast %5 : vector<1x32xf32> to vector<8x32xf32>
    %7 = arith.addf %4, %6 : vector<8x32xf32>
    %c0_5 = arith.constant 0 : index
    %c0_6 = arith.constant 0 : index
    %8 = vector.load %arg4[%c0_5, %c0_6] : memref<8x32xf32, #tpu.memory_space<vmem>>, vector<8x32xf32>
    tpu.vector_store %arg4[%c0_5, %c0_6], %7 {strides = array<i32>} : memref<8x32xf32, #tpu.memory_space<vmem>>, vector<8x32xf32>,
    return
  }
  func.func @transform_0(%arg0: i32) -> (i32, i32) {
    %c0_i32 = arith.constant 0 : i32
    %c0_i32_0 = arith.constant 0 : i32
    return %arg0, %c0_i32 : i32, i32
  }
  func.func @transform_1(%arg0: i32) -> (i32, i32) {
    %c0_i32 = arith.constant 0 : i32
    %c0_i32_0 = arith.constant 0 : i32
    %c0_i32_1 = arith.constant 0 : i32
    return %c0_i32, %c0_i32_0 : i32, i32
  }
  func.func @transform_2(%arg0: i32) -> (i32, i32) {
    %c0_i32 = arith.constant 0 : i32
    %c0_i32_0 = arith.constant 0 : i32
    %c0_i32_1 = arith.constant 0 : i32
    return %c0_i32, %c0_i32_0 : i32, i32
  }
  func.func @transform_3(%arg0: i32) -> (i32, i32) {
    %c0_i32 = arith.constant 0 : i32
    %c0_i32_0 = arith.constant 0 : i32
    return %arg0, %c0_i32 : i32, i32
  }
}

module attributes {stable_mosaic.version = 11 : i64} {
  func.func @_ffn_kernel(%arg0: i32, %arg1: memref<8x32xbf16, #tpu.memory_space<vmem>>, %arg2: memref<1x32xf32, #tpu.memory_space<vmem>>, %arg3: memref<1x32xf32, #tpu.memory_space<vmem>>, %arg4: memref<32x128xbf16, #tpu.memory_space<vmem>>, %arg5: memref<1x128xf32, #tpu.memory_space<vmem>>, %arg6: memref<128x32xbf16, #tpu.memory_space<vmem>>, %arg7: memref<1x32xf32, #tpu.memory_space<vmem>>, %arg8: memref<8x32xbf16, #tpu.memory_space<vmem>>, %arg9: memref<1x2x32xf32, #tpu.memory_space<vmem>>) attributes {dimension_semantics = [#tpu.dimension_semantics<parallel>], iteration_bounds = array<i64: 2>, scalar_prefetch = 0 : i64, scratch_operands = 0 : i64, tpu.core_type = #tpu.core_type<tc>, window_params = [{transform_indices = @transform_0, window_bounds = array<i64: 8, 32>}, {pipeline_mode = #tpu.pipeline_mode<synchronous>, transform_indices = @transform_1, window_bounds = array<i64: 1, 32>}, {pipeline_mode = #tpu.pipeline_mode<synchronous>, transform_indices = @transform_2, window_bounds = array<i64: 1, 32>}, {pipeline_mode = #tpu.pipeline_mode<synchronous>, transform_indices = @transform_3, window_bounds = array<i64: 32, 128>}, {pipeline_mode = #tpu.pipeline_mode<synchronous>, transform_indices = @transform_4, window_bounds = array<i64: 1, 128>}, {pipeline_mode = #tpu.pipeline_mode<synchronous>, transform_indices = @transform_5, window_bounds = array<i64: 128, 32>}, {pipeline_mode = #tpu.pipeline_mode<synchronous>, transform_indices = @transform_6, window_bounds = array<i64: 1, 32>}, {transform_indices = @transform_7, window_bounds = array<i64: 8, 32>}, {transform_indices = @transform_8, window_bounds = array<i64: 1, 2, 32>}]} {
    %c0 = arith.constant 0 : index
    %c0_0 = arith.constant 0 : index
    %0 = vector.load %arg1[%c0, %c0_0] : memref<8x32xbf16, #tpu.memory_space<vmem>>, vector<8x32xbf16>
    %1 = arith.extf %0 : vector<8x32xbf16> to vector<8x32xf32>
    %c0_1 = arith.constant 0 : index
    %c0_2 = arith.constant 0 : index
    %2 = vector.load %arg2[%c0_1, %c0_2] : memref<1x32xf32, #tpu.memory_space<vmem>>, vector<1x32xf32>
    %3 = vector.broadcast %2 : vector<1x32xf32> to vector<8x32xf32>
    %4 = arith.mulf %1, %3 : vector<8x32xf32>
    %c0_3 = arith.constant 0 : index
    %c0_4 = arith.constant 0 : index
    %5 = vector.load %arg3[%c0_3, %c0_4] : memref<1x32xf32, #tpu.memory_space<vmem>>, vector<1x32xf32>
    %6 = vector.broadcast %5 : vector<1x32xf32> to vector<8x32xf32>
    %7 = arith.addf %4, %6 : vector<8x32xf32>
    %8 = arith.truncf %7 : vector<8x32xf32> to vector<8x32xbf16>
    %c0_5 = arith.constant 0 : index
    %c0_6 = arith.constant 0 : index
    %9 = vector.load %arg4[%c0_5, %c0_6] : memref<32x128xbf16, #tpu.memory_space<vmem>>, vector<32x128xbf16>
    %cst = arith.constant dense<0.000000e+00> : vector<8x128xf32>
    %10 = tpu.matmul %8, %9, %cst {dimension_numbers = #tpu.dot_dimension_numbers<[1], [0], [0], [1], [0, 0, 1, 1], [], []>} : vector<8x32xbf16>, vector<32x128xbf16>, vector<8x128xf32> -> vector<8x128xf32>
    %c0_7 = arith.constant 0 : index
    %c0_8 = arith.constant 0 : index
    %11 = vector.load %arg5[%c0_7, %c0_8] : memref<1x128xf32, #tpu.memory_space<vmem>>, vector<1x128xf32>
    %12 = vector.broadcast %11 : vector<1x128xf32> to vector<8x128xf32>
    %13 = arith.addf %10, %12 : vector<8x128xf32>
    %cst_9 = arith.constant 0.000000e+00 : f32
    %14 = vector.broadcast %cst_9 : f32 to vector<8x128xf32>
    %15 = arith.maximumf %13, %14 : vector<8x128xf32>
    %16 = arith.truncf %15 : vector<8x128xf32> to vector<8x128xbf16>
    %c0_10 = arith.constant 0 : index
    %c0_11 = arith.constant 0 : index
    %17 = vector.load %arg6[%c0_10, %c0_11] : memref<128x32xbf16, #tpu.memory_space<vmem>>, vector<128x32xbf16>
    %cst_12 = arith.constant dense<0.000000e+00> : vector<8x32xf32>
    %18 = tpu.matmul %16, %17, %cst_12 {dimension_numbers = #tpu.dot_dimension_numbers<[1], [0], [0], [1], [0, 0, 1, 1], [], []>} : vector<8x128xbf16>, vector<128x32xbf16>, vector<8x32xf32> -> vector<8x32xf32>
    %19 = arith.addf %7, %18 : vector<8x32xf32>
    %c0_13 = arith.constant 0 : index
    %c0_14 = arith.constant 0 : index
    %20 = vector.load %arg7[%c0_13, %c0_14] : memref<1x32xf32, #tpu.memory_space<vmem>>, vector<1x32xf32>
    %21 = vector.broadcast %20 : vector<1x32xf32> to vector<8x32xf32>
    %22 = arith.addf %19, %21 : vector<8x32xf32>
    %23 = arith.truncf %22 : vector<8x32xf32> to vector<8x32xbf16>
    %c0_15 = arith.constant 0 : index
    %c0_16 = arith.constant 0 : index
    %24 = vector.load %arg8[%c0_15, %c0_16] : memref<8x32xbf16, #tpu.memory_space<vmem>>, vector<8x32xbf16>
    tpu.vector_store %arg8[%c0_15, %c0_16], %23 {strides = array<i32>} : memref<8x32xbf16, #tpu.memory_space<vmem>>, vector<8x32xbf16>,
    %cst_17 = arith.constant dense<0.000000e+00> : vector<32xf32>
    %25 = vector.multi_reduction <add>, %22, %cst_17 [0] : vector<8x32xf32> to vector<32xf32>
    %26 = vector.shape_cast %25 : vector<32xf32> to vector<1x32xf32>
    %cst_18 = arith.constant 1.250000e-01 : f32
    %27 = vector.broadcast %cst_18 : f32 to vector<1x32xf32>
    %28 = arith.mulf %26, %27 : vector<1x32xf32>
    %29 = vector.broadcast %28 : vector<1x32xf32> to vector<8x32xf32>
    %30 = arith.subf %22, %29 : vector<8x32xf32>
    %31 = arith.mulf %30, %30 : vector<8x32xf32>
    %cst_19 = arith.constant dense<0.000000e+00> : vector<32xf32>
    %32 = vector.multi_reduction <add>, %31, %cst_19 [0] : vector<8x32xf32> to vector<32xf32>
    %33 = vector.shape_cast %32 : vector<32xf32> to vector<1x32xf32>
    %34 = tpu.concatenate %26, %33 in 0 : vector<1x32xf32>, vector<1x32xf32> -> vector<2x32xf32>
    %35 = vector.shape_cast %34 : vector<2x32xf32> to vector<1x2x32xf32>
    %c0_20 = arith.constant 0 : index
    %c0_21 = arith.constant 0 : index
    %c0_22 = arith.constant 0 : index
    %36 = vector.load %arg9[%c0_20, %c0_21, %c0_22] : memref<1x2x32xf32, #tpu.memory_space<vmem>>, vector<1x2x32xf32>
    tpu.vector_store %arg9[%c0_20, %c0_21, %c0_22], %35 {strides = array<i32>} : memref<1x2x32xf32, #tpu.memory_space<vmem>>, vector<1x2x32xf32>,
    return
  }
  func.func @transform_0(%arg0: i32) -> (i32, i32) {
    %c0_i32 = arith.constant 0 : i32
    %c0_i32_0 = arith.constant 0 : i32
    return %arg0, %c0_i32 : i32, i32
  }
  func.func @transform_1(%arg0: i32) -> (i32, i32) {
    %c0_i32 = arith.constant 0 : i32
    %c0_i32_0 = arith.constant 0 : i32
    %c0_i32_1 = arith.constant 0 : i32
    return %c0_i32, %c0_i32_0 : i32, i32
  }
  func.func @transform_2(%arg0: i32) -> (i32, i32) {
    %c0_i32 = arith.constant 0 : i32
    %c0_i32_0 = arith.constant 0 : i32
    %c0_i32_1 = arith.constant 0 : i32
    return %c0_i32, %c0_i32_0 : i32, i32
  }
  func.func @transform_3(%arg0: i32) -> (i32, i32) {
    %c0_i32 = arith.constant 0 : i32
    %c0_i32_0 = arith.constant 0 : i32
    %c0_i32_1 = arith.constant 0 : i32
    return %c0_i32, %c0_i32_0 : i32, i32
  }
  func.func @transform_4(%arg0: i32) -> (i32, i32) {
    %c0_i32 = arith.constant 0 : i32
    %c0_i32_0 = arith.constant 0 : i32
    %c0_i32_1 = arith.constant 0 : i32
    return %c0_i32, %c0_i32_0 : i32, i32
  }
  func.func @transform_5(%arg0: i32) -> (i32, i32) {
    %c0_i32 = arith.constant 0 : i32
    %c0_i32_0 = arith.constant 0 : i32
    %c0_i32_1 = arith.constant 0 : i32
    return %c0_i32, %c0_i32_0 : i32, i32
  }
  func.func @transform_6(%arg0: i32) -> (i32, i32) {
    %c0_i32 = arith.constant 0 : i32
    %c0_i32_0 = arith.constant 0 : i32
    %c0_i32_1 = arith.constant 0 : i32
    return %c0_i32, %c0_i32_0 : i32, i32
  }
  func.func @transform_7(%arg0: i32) -> (i32, i32) {
    %c0_i32 = arith.constant 0 : i32
    %c0_i32_0 = arith.constant 0 : i32
    return %arg0, %c0_i32 : i32, i32
  }
  func.func @transform_8(%arg0: i32) -> (i32, i32, i32) {
    %c0_i32 = arith.constant 0 : i32
    %c0_i32_0 = arith.constant 0 : i32
    %c0_i32_1 = arith.constant 0 : i32
    return %arg0, %c0_i32, %c0_i32_0 : i32, i32, i32
  }
}

</mosaic_0001>

<bundles_post_ra>
// kernel: graph_attention_encoder.9
= control target key start
LH: loop header
LB: loop body
LE: loop exit
PB: predicated region body
PF: predicated region fallthrough
CT: control target
= control target key end

     0   :  { %8 = vsyncpa [#allocation3], 0  ;;  %s501_s0 = inlined_call_operand.vmem [shape: bf16[16,32], index: 0, kind: input, shape index: {}]   ;;  %s502_s1 = inlined_call_operand.vmem [shape: f32[1,32], index: 1, kind: input, shape index: {}]   ;;  %s503_s2 = inlined_call_operand.vmem [shape: f32[1,32], index: 2, kind: input, shape index: {}]   ;;  %s504_s3 = inlined_call_operand.hbm [shape: f32[16,32], index: 3, kind: output, shape index: {}]  }
   0x1   :  { %10 = vsyncpa [#allocation3 + $0x1], 0  ;;  %s395_s12 = smov 0   ;;  %s397_s13 = smov 0  }
   0x2   :  { %s399_s14 = smov 0   ;;  %s401_s15 = smov 0  }
   0x3 LB: > { %s416_s16 = sadd.s32 4294967295, %s372_s15   ;;  %s259_s17 = sadd.s32 4294967294, %s372_s15   ;;  %s372_s15 = sphi %s401_s15, %s510_s15   ;;  %s368_s14 = sphi %s399_s14, %s509_s14   ;;  %s364_s13 = sphi %s397_s13, %s508_s13   ;;  %s360_s12 = sphi %s395_s12, %s507_s12  }
   0x4   : > { %s420_s18 = sadd.s32 1, %s372_s15   ;;  %s91_s19 = sadd.s32 1, %s368_s14 }
   0x5   : > { %s88_s20 = ssub.s32 %s372_s15, %s420_s18  ;;  %p101_p0 = scmp.ne.s32.totalorder %s368_s14, %s364_s13 }
   0x6   : > { %p89_p1 = scmp.eq.s32.totalorder %s88_s20, 0  ;;  %p102_p2 = scmp.eq.s32.totalorder %s416_s16, 1 }
   0x7   : > { %p107_p3 = scmp.ne.s32.totalorder %s364_s13, %s360_s12  ;;  %p108_p4 = scmp.eq.s32.totalorder %s259_s17, 1 }
   0x8   : > { %s431_s21 = scalar_select %p89_p1, %s368_s14, %s91_s19  }
   0x9   : > { %p433_p5 = por %p102_p2, %p101_p0  ;;  %p437_p6 = por %p108_p4, %p107_p3 }
   0xa   : > { %p262_p7 = scmp.ge.s32.totalorder %s372_s15, 1  ;;  %p139_p8 = scmp.lt.s32.totalorder %s372_s15, 3 }
   0xc   : > { %p140_p9 = pnand %p262_p7, %p139_p8 }
   0xd   : > { %s159_s24 = sand.u32 (!%p140_p9), 1, %s364_s13   ;;  %p162_p10 = scmp.lt.s32.totalorder (!%p140_p9), %s416_s16, 1  ;;  %v265_v1 = vld [vmem:[%s502_s1] ss:$0 sm:$0xff] (!%p140_p9)  ;;  %vm184_vm0 = vcmask (!%p140_p9), 261120  }
   0xe   : > { %143 = sbr.rel (%p140_p9) target bundleno = 46 (0x2e), region = 32  ;;  %s263_s25 = sshll.u32 (!%p140_p9), %s159_s24, 3  ;;  %v266_v3 = vld [vmem:[%s503_s2] ss:$0 sm:$0xff] (!%p140_p9) }
   0xf   : > { %s161_s8 = scalar_lea.vmem (!%p140_p9), [#allocation2], %s263_s25  ;;  %s268_s10 = sshll.u32 (!%p140_p9), %s416_s16, 7 }
  0x10   : > { %s200_s9 = sshll.u32 (!%p140_p9), %s161_s8, 4  ;;  %s461_s19 = scalar_lea.hbm (!%p140_p9), %s504_s3, %s268_s10  ;;  %s456_s9 = int_to_ptr.vmem [resolvable:$true] %s200_s9 }
  0x11   : > { %s187_s20 = scalar_lea.sflag (!%p140_p9), [#allocation3], %s159_s24 }
  0x15   : > { %s163_s26 = scalar_select %p162_p10, %s416_s16, 1 }
  0x16   : > { %s374_s16 = smov [#allocation2]  }
  0x17   : > { %s264_s27 = sshll.u32 %s163_s26, 2  ;;  %s310_s26 = scalar_lea.vmem %s456_s9, 128 }
  0x18   : > { %s165_s30 = scalar_lea.vmem %s501_s0, %s264_s27  ;;  %p311_p11 = scmp.ne.s32.totalorder %s456_s9, %s310_s26 }
  0x19   : > { %v166_v0 = vld [vmem:[%s165_s30] sm:$0xf]  ;;  %s314_s25 = sshll.u32 %s374_s16, 4  ;;  %s315_s25 = int_to_ptr.vmem [resolvable:$false] %s314_s25 }
  0x1a   : > { %v167_v2 = vunpack.c.l.bf16 %v166_v0  ;;  %p312_p12 = pnand %p311_p11, %p433_p5  ;;  %s316_s27 = scalar_lea.vmem %s315_s25, 256 }
  0x1b   : > { %p317_p0 = scmp.lt.s32.totalorder %s456_s9, %s315_s25  ;;  %p318_p1 = scmp.lt.s32.totalorder %s316_s27, %s310_s26 }
  0x1c   : > { %v175_v4 = vmul.f32 %v265_v1, %v167_v2  ;;  %p313_p13 = pneg %p312_p12 }
  0x1d   : > { %p319_p2 = por %p318_p1, %p317_p0 }
  0x1e   : > { %v183_v5 = vadd.f32 %v266_v3, %v175_v4 }
  0x1f   : > { %p320_p3 = pnand %p319_p2, %p313_p13 }
  0x20   : > { %185 = vst.msk [vmem:[%s161_s8] sm:$0xff] %vm184_vm0, %v183_v5 }
  0x21   : > { %323 = shalt.err (!%p320_p3)
}
  0x22   : > { %s324_s24 = scalar_lea.hbm %s461_s19, 128  ;;  %s328_s30 = scalar_lea.hbm %s504_s3, 256 }
  0x23   : > { %p325_p4 = scmp.ne.s32.totalorder %s461_s19, %s324_s24  ;;  %p329_p9 = scmp.lt.u32.totalorder %s461_s19, %s504_s3 }
  0x24   : > { %p330_p10 = scmp.lt.u32.totalorder %s328_s30, %s324_s24  ;;  %p332_p12 = scmp.lt.u32.totalorder %s324_s24, %s461_s19 }
  0x25   : > { %p326_p7 = pnand %p325_p4, %p433_p5 }
  0x26   : > { %p331_p11 = por %p330_p10, %p329_p9 }
  0x27   : > { %p327_p8 = pneg %p326_p7 }
  0x28   : > { %p333_p13 = por %p332_p12, %p331_p11 }
  0x2a   : > { %p334_p0 = pnand %p333_p13, %p327_p8 }
  0x2c   : > { %337 = shalt.err (!%p334_p0)
}
  0x2d   : > { %271 = dma.vmem_to_hbm [thread:$0]  (%p433_p5), %s456_s9, 128, %s461_s19, %s187_s20  }
  0x2e PF: > { %p277_p1 = scmp.ge.s32.totalorder %s372_s15, 2  ;;  %s212_s6 = sand.u32 1, %s360_s12  }
  0x2f   : > { %s213_s7 = scalar_lea.sflag [#allocation3], %s212_s6 }
  0x30   : > { %p274_p2 = pnand %p277_p1, %p437_p6 }
  0x32   : > { %355 = dma.done.wait (!%p274_p2), %s213_s7, 128  }
  0x33   : > { %357 = vsyncadd (!%p274_p2), %s213_s7, 4294967168  ;;  %p13_p3 = scmp.ge.s32.totalorder %s420_s18, 4   ;;  %s507_s12 = smov %s364_s13 }
  0x34   : > { %s508_s13 = smov %s368_s14  ;;  %s509_s14 = smov %s431_s21 }
  0x35   : > { %s510_s15 = smov %s420_s18  ;;  %15 = sbr.rel (!%p13_p3) target bundleno = 3 (0x3), region = 67 }
  0x3c   :  { %218 = vsyncpa [#allocation3], 1 }
  0x3d   :  { %220 = vsyncpa [#allocation3 + $0x1], 1 }

// kernel: graph_attention_encoder.6
= control target key start
LH: loop header
LB: loop body
LE: loop exit
PB: predicated region body
PF: predicated region fallthrough
CT: control target
= control target key end

     0   :  { %s762_s27 = smov 0   ;;  %s835_s0 = inlined_call_operand.vmem [shape: bf16[16,32], index: 0, kind: input, shape index: {}]   ;;  %s836_s1 = inlined_call_operand.vmem [shape: f32[1,32], index: 1, kind: input, shape index: {}]   ;;  %s837_s2 = inlined_call_operand.vmem [shape: f32[1,32], index: 2, kind: input, shape index: {}]   ;;  %s838_s3 = inlined_call_operand.vmem [shape: bf16[32,128], index: 3, kind: input, shape index: {}]   ;;  %s839_s4 = inlined_call_operand.vmem [shape: f32[1,128], index: 4, kind: input, shape index: {}]   ;;  %s840_s5 = inlined_call_operand.vmem [shape: bf16[128,32], index: 5, kind: input, shape index: {}]   ;;  %s841_s6 = inlined_call_operand.vmem [shape: f32[1,32], index: 6, kind: input, shape index: {}]   ;;  %s842_s7 = inlined_call_operand.vmem [shape: bf16[16,32], index: 7, kind: output, shape index: {0}]   ;;  %s843_s8 = inlined_call_operand.vmem [shape: f32[2,2,32], index: 8, kind: output, shape index: {1}]  }
   0x1 LB: > { %s622_s28 = sadd.s32 4294967295, %s713_s27   ;;  %p626_p0 = scmp.ge.s32.totalorder %s713_s27, 1  ;;  %s713_s27 = sphi %s762_s27, %s19_s27  }
   0x2   : > { %p264_p1 = scmp.lt.s32.totalorder %s713_s27, 3 }
   0x4   : > { %p265_p2 = pnand %p626_p0, %p264_p1 }
   0x5   : > { %v697_v0 = vld [vmem:[%s838_s3] sm:$0xff] (!%p265_p2)   ;;  %v715_v1 = vmov (!%p265_p2), 0.0   ;;  %v698_v2 = vld [vmem:[%s838_s3 + $0x8] sm:$0xff] (!%p265_p2)   ;;  %vm716_vm0 = vmmov (!%p265_p2), 0   ;;  %p300_p3 = scmp.lt.s32.totalorder (!%p265_p2), %s622_s28, 1  ;;  %v701_v9 = vld [vmem:[%s840_s5 + $0x10] sm:$0xff] (!%p265_p2)  }
   0x6   : > { %268 = sbr.rel (%p265_p2) target bundleno = 493 (0x1ed), region = 48  ;;  %659 = vmatprep.subr.bf16.mxu0 (!%p265_p2), %v715_v1  ;;  %667 = vmatprep.subr.bf16.mxu1 (!%p265_p2), %v715_v1  ;;  %v699_v3 = vld [vmem:[%s840_s5] sm:$0xff] (!%p265_p2)   ;;  %v700_v4 = vld [vmem:[%s840_s5 + $0x8] sm:$0xff] (!%p265_p2)   ;;  %v702_v12 = vld [vmem:[%s840_s5 + $0x18] sm:$0xff] (!%p265_p2)   ;;  %vm355_vm1 = vcmask (!%p265_p2), 261120   ;;  %vm515_vm2 = vcmask (!%p265_p2), 257024  }
   0x7   : > { %660 = vmatpush3.bf16.msra.mxu0 (!%p265_p2), %v697_v0  ;;  %663 = vmatprep.mubr.msk.bf16.mxu0 (!%p265_p2), %vm716_vm0, %v715_v1  ;;  %v630_v6 = vld [vmem:[%s836_s1] ss:$0 sm:$0xff] (!%p265_p2)  ;;  %v704_v15 = vld [vmem:[%s840_s5 + $0x28] sm:$0xff] (!%p265_p2)   ;;  %v705_v16 = vld [vmem:[%s840_s5 + $0x30] sm:$0xff] (!%p265_p2)   ;;  %vm534_vm3 = vcmask (!%p265_p2), 1040384   ;;  %vm536_vm4 = vcmask (!%p265_p2), 254976  }
   0x8   : > { %661 = vmatprep.subr.bf16.mxu0 (!%p265_p2), %v715_v1  ;;  %683 = vmatprep.mubr.msk.bf16.mxu1 (!%p265_p2), %vm716_vm0, %v715_v1  ;;  %v631_v8 = vld [vmem:[%s837_s2] ss:$0 sm:$0xff] (!%p265_p2)  ;;  %v706_v17 = vld [vmem:[%s840_s5 + $0x38] sm:$0xff] (!%p265_p2)  }
   0x9   : > { %668 = vmatpush3.bf16.msra.mxu1 (!%p265_p2), %v699_v3  ;;  %v703_v14 = vld [vmem:[%s840_s5 + $0x20] sm:$0xff] (!%p265_p2)  }
   0xa   : > { %669 = vmatprep.subr.bf16.mxu1 (!%p265_p2), %v715_v1  ;;  %v632_v18 = vld [vmem:[%s839_s4] ss:$0 sm:$0xff] (!%p265_p2) }
   0xb   : > { %662 = vmatpush3.bf16.msra.mxu0 (!%p265_p2), %v698_v2  ;;  %v644_v27 = vld [vmem:[%s841_s6] ss:$0 sm:$0xff] (!%p265_p2) }
   0xd   : > { %s845_s28 = smov (!%p300_p3, %s622_s28), 1  ;;  %670 = vmatpush3.bf16.msra.mxu1 %v700_v4 }
   0xe   : > { %s627_s15 = sshll.u32 %s845_s28, 2  ;;  %671 = vmatprep.subr.bf16.mxu1 %v715_v1 }
   0xf   : > { %s303_s18 = scalar_lea.vmem %s835_s0, %s627_s15  ;;  %s307_s22 = scalar_lea.vmem %s842_s7, %s627_s15 }
  0x10   : > { %v313_v5 = vld [vmem:[%s303_s18] sm:$0xf]  ;;  %s629_s15 = sshll.u32 %s845_s28, 1 }
  0x11   : > { %v314_v7 = vunpack.c.l.bf16 %v313_v5  ;;  %672 = vmatpush3.bf16.msra.mxu1 %v701_v9  ;;  %s311_s25 = scalar_lea.vmem %s843_s8, %s629_s15 }
  0x12   : > { %673 = vmatprep.subr.bf16.mxu1 %v715_v1 }
  0x13   : > { %v322_v10 = vmul.f32 %v630_v6, %v314_v7 }
  0x15   : > { %v330_v11 = vadd.f32 %v631_v8, %v322_v10  ;;  %674 = vmatpush3.bf16.msra.mxu1 %v702_v12 }
  0x16   : > { %675 = vmatprep.subr.bf16.mxu1 %v715_v1 }
  0x17   : > { %v331_v13 = vpack.c.bf16 %v330_v11, %v330_v11 }
  0x19   : > { %664 = vmatmul.mubr.msk.bf16.vlgmr.msra.gmra.mrb[0].mxu0 %vm355_vm1, %v331_v13  ;;  %676 = vmatpush3.bf16.msra.mxu1 %v703_v14 }
  0x1a   : > { %677 = vmatprep.subr.bf16.mxu1 %v715_v1 }
  0x1d   : > { %678 = vmatpush3.bf16.msra.mxu1 %v704_v15 }
  0x1e   : > { %679 = vmatprep.subr.bf16.mxu1 %v715_v1 }
  0x21   : > { %680 = vmatpush3.bf16.msra.mxu1 %v705_v16 }
  0x22   : > { %681 = vmatprep.subr.bf16.mxu1 %v715_v1 }
  0x25   : > { %682 = vmatpush3.bf16.msra.mxu1 %v706_v17 }
  0xec   : > { %v393_v19 = vpop.f32.mrb[0].mxu0 }
  0xed   : > { %v394_v20 = vadd.f32 %v632_v18, %v393_v19  ;;  %v665_v21 = vpop.f32.mrb[1].mxu0 }
  0xee   : > { %v396_v22 = vpop.f32.mrb[2].mxu0 }
  0xef   : > { %v399_v23 = vmax.f32 %v394_v20, 0.0  ;;  %v666_v24 = vpop.f32.mrb[3].mxu0 }
  0xf1   : > { %v400_v25 = vpack.c.bf16 %v399_v23, %v399_v23 }
  0xf3   : > { %684 = vmatmul.mubr.bf16.vlgmr.msra.gmra.mrb[0].mxu1 %v400_v25 }
 0x1c6   : > { %v499_v26 = vpop.f32.mrb[0].mxu1 }
 0x1c7   : > { %v505_v28 = vadd.f32 %v499_v26, %v330_v11  ;;  %v685_v29 = vpop.f32.mrb[1].mxu1 }
 0x1c8   : > { %v502_v30 = vpop.f32.mrb[2].mxu1 }
 0x1c9   : > { %v513_v31 = vadd.f32 %v644_v27, %v505_v28  ;;  %v686_v32 = vpop.f32.mrb[3].mxu1 }
 0x1cb   : > { %v514_v33 = vpack.c.bf16 %v513_v31, %v513_v31  ;;  %v517_v34 = vsel %vm355_vm1, %v513_v31, 0.0 }
 0x1cc   : > { %v518_v35 = vrot.slane %v517_v34, 4 }
 0x1cd   : > { %516 = vst.msk [vmem:[%s307_s22] sm:$0xf] %vm515_vm2, %v514_v33 }
 0x1ce   : > { %v519_v36 = vadd.f32 %v518_v35, %v517_v34 }
 0x1d0   : > { %v520_v37 = vrot.slane %v519_v36, 2 }
 0x1d2   : > { %v521_v38 = vadd.f32 %v520_v37, %v519_v36 }
 0x1d4   : > { %v522_v39 = vrot.slane %v521_v38, 1 }
 0x1d6   : > { %v523_v40 = vadd.f32 %v522_v39, %v521_v38 }
 0x1d8   : > { %v524_v41 = vmul.f32 0.125, %v523_v40 }
 0x1da   : > { %v525_v42 = vsub.f32 %v513_v31, %v524_v41 }
 0x1dc   : > { %v526_v43 = vmul.f32 %v525_v42, %v525_v42 }
 0x1de   : > { %v527_v44 = vsel %vm355_vm1, %v526_v43, 0.0 }
 0x1df   : > { %v528_v45 = vrot.slane %v527_v44, 4 }
 0x1e1   : > { %v529_v46 = vadd.f32 %v528_v45, %v527_v44 }
 0x1e3   : > { %v530_v47 = vrot.slane %v529_v46, 2 }
 0x1e5   : > { %v531_v48 = vadd.f32 %v530_v47, %v529_v46 }
 0x1e7   : > { %v532_v49 = vrot.slane %v531_v48, 1 }
 0x1e9   : > { %v533_v50 = vadd.f32 %v532_v49, %v531_v48 }
 0x1eb   : > { %v535_v51 = vsel %vm534_vm3, %v523_v40, %v533_v50 }
 0x1ec   : > { %537 = vst.msk [vmem:[%s311_s25] sm:$0x3] %vm536_vm4, %v535_v51 }
 0x1ed PF: > { %s19_s27 = sadd.s32 1, %s713_s27  }
 0x1ee   : > { %p16_p4 = scmp.ge.s32.totalorder %s19_s27, 4  }
 0x1f0   :  { %18 = sbr.rel (!%p16_p4) target bundleno = 1 (0x1), region = 90 }

// kernel: graph_attention_encoder.5
= control target key start
LH: loop header
LB: loop body
LE: loop exit
PB: predicated region body
PF: predicated region fallthrough
CT: control target
= control target key end

     0   :  { %s1831_s24 = smov 0   ;;  %s2046_s0 = inlined_call_operand.vmem [shape: bf16[2,8,32], index: 0, kind: input, shape index: {}]   ;;  %s2047_s1 = inlined_call_operand.vmem [shape: bf16[2,8,8], index: 1, kind: input, shape index: {}]   ;;  %s2048_s2 = inlined_call_operand.vmem [shape: f32[1,32], index: 2, kind: input, shape index: {}]   ;;  %s2049_s3 = inlined_call_operand.vmem [shape: f32[1,32], index: 3, kind: input, shape index: {}]   ;;  %s2050_s4 = inlined_call_operand.vmem [shape: bf16[32,96], index: 4, kind: input, shape index: {}]   ;;  %s2051_s5 = inlined_call_operand.vmem [shape: bf16[32,32], index: 5, kind: input, shape index: {}]   ;;  %s2052_s6 = inlined_call_operand.vmem [shape: bf16[2,8,32], index: 6, kind: output, shape index: {0}]   ;;  %s2053_s7 = inlined_call_operand.vmem [shape: f32[2,2,32], index: 7, kind: output, shape index: {1}]  }
   0x1 LB: > { %s1594_s25 = sadd.s32 4294967295, %s1771_s24   ;;  %p1598_p0 = scmp.ge.s32.totalorder %s1771_s24, 1  ;;  %s1771_s24 = sphi %s1831_s24, %s18_s24  }
   0x2   : > { %p248_p1 = scmp.lt.s32.totalorder %s1771_s24, 3 }
   0x4   : > { %p249_p2 = pnand %p1598_p0, %p248_p1 }
   0x5   : > { %v1745_v0 = vld [vmem:[%s2050_s4] sm:$0xff] (!%p249_p2)   ;;  %v1773_v1 = vmov (!%p249_p2), 0.0   ;;  %v1746_v2 = vld [vmem:[%s2050_s4 + $0x8] sm:$0xff] (!%p249_p2)   ;;  %vm1774_vm0 = vmmov (!%p249_p2), 0   ;;  %p286_p3 = scmp.lt.s32.totalorder (!%p249_p2), %s1594_s25, 1  ;;  %vm338_vm1 = vcmask (!%p249_p2), 261120   ;;  %v421_v16 = vlaneseq (!%p249_p2) }
   0x6   : > { %252 = sbr.rel (%p249_p2) target bundleno = 1569 (0x621), region = 44  ;;  %1655 = vmatprep.subr.bf16.mxu0 (!%p249_p2), %v1773_v1  ;;  %1663 = vmatprep.subr.bf16.mxu1 (!%p249_p2), %v1773_v1  ;;  %v1603_v4 = vld [vmem:[%s2048_s2] ss:$0 sm:$0xff] (!%p249_p2)  ;;  %s1775_s15 = smov (!%p249_p2), 80   ;;  %v1782_v14 = vmov (!%p249_p2), 1983009808  }
   0x7   : > { %1656 = vmatpush3.bf16.msra.mxu0 (!%p249_p2), %v1745_v0  ;;  %1659 = vmatprep.mubr.msk.bf16.mxu0 (!%p249_p2), %vm1774_vm0, %v1773_v1  ;;  %v1604_v6 = vld [vmem:[%s2049_s3] ss:$0 sm:$0xff] (!%p249_p2)  ;;  %s1776_s16 = smov (!%p249_p2), 96   ;;  %s1777_s17 = smov (!%p249_p2), 72   ;;  %v419_v15 = vunpack.c.l.s4 (!%p249_p2), %v1782_v14  ;;  %v1783_v17 = vmov (!%p249_p2), 1934713408  }
   0x8   : > { %1657 = vmatprep.subr.bf16.mxu0 (!%p249_p2), %v1773_v1  ;;  %1665 = vmatprep.mubr.msk.bf16.mxu1 (!%p249_p2), %vm1774_vm0, %v1773_v1  ;;  %s1778_s18 = smov (!%p249_p2), 88   ;;  %s1779_s19 = smov (!%p249_p2), 112   ;;  %v483_v18 = vunpack.c.l.s4 (!%p249_p2), %v1783_v17  ;;  %v422_v20 = vshrl.u32 (!%p249_p2), %v421_v16, 7  ;;  %vm836_vm2 = vcmask (!%p249_p2), 64512   ;;  %vm1078_vm3 = vcmask (!%p249_p2), 1043456  }
   0x9   : > { %s1780_s20 = smov (!%p249_p2), 120   ;;  %s1781_s21 = smov (!%p249_p2), 104   ;;  %v420_v19 = vunpack.c.0.s8 (!%p249_p2), %v419_v15  ;;  %vm1409_vm4 = vcmask (!%p249_p2), 130048   ;;  %vm1411_vm5 = vcmask (!%p249_p2), 195584   ;;  %vm1475_vm6 = vcmask (!%p249_p2), 257024  }
   0xa   : > { %v484_v23 = vunpack.c.0.s8 (!%p249_p2), %v483_v18  ;;  %s1784_s27 = smov (!%p249_p2), 56   ;;  %s1785_s28 = smov (!%p249_p2), 64   ;;  %vm1494_vm7 = vcmask (!%p249_p2), 1040384   ;;  %vm1496_vm8 = vcmask (!%p249_p2), 254976  }
   0xb   : > { %1658 = vmatpush3.bf16.msra.mxu0 (!%p249_p2), %v1746_v2  ;;  %v1884_v24 = vsub.s32 (!%p249_p2), %v420_v19, %v422_v20  ;;  %s1786_s29 = smov (!%p249_p2), 48   ;;  %s1787_s8 = smov (!%p249_p2), 40  }
   0xc   : > { %1669 = vmatprep.subr.bf16.mxu0 (!%p249_p2), %v1773_v1  ;;  %v1886_v31 = vsub.s32 (!%p249_p2), %v484_v23, %v422_v20  ;;  %s1788_s13 = smov (!%p249_p2), 16   ;;  %s1789_s14 = smov (!%p249_p2), 8  }
   0xd   : > { %s2055_s25 = smov (!%p286_p3, %s1594_s25), 1 }
   0xe   : > { %s1855_s30 = sshll.u32 %s2055_s25, 2 }
   0xf   : > { %s289_s10 = scalar_lea.vmem %s2046_s0, %s1855_s30  ;;  %s293_s26 = scalar_lea.vmem %s2047_s1, %s1855_s30 }
  0x10   : > { %v303_v3 = vld [vmem:[%s289_s10] sm:$0xf] }
  0x11   : > { %v304_v5 = vunpack.c.l.bf16 %v303_v3 }
  0x13   : > { %v312_v7 = vmul.f32 %v1603_v4, %v304_v5 }
  0x15   : > { %v1868_v8 = vadd.f32 %v1604_v6, %v312_v7 }
  0x17   : > { %v321_v9 = vpack.c.bf16 %v1868_v8, %v1868_v8 }
  0x19   : > { %1660 = vmatmul.mubr.msk.bf16.vlgmr.msra.gmra.mrb[0].mxu0 %vm338_vm1, %v321_v9 }
  0x1a   : > { %1671 = vmatprep.mubr.msk.bf16.mxu0 %vm1774_vm0, %v1773_v1 }
  0xec   : > { %v1875_v10 = vpop.f32.mrb[0].mxu0 }
  0xed   : > { %398 = vrot.lane.b32.xlu1 %v1875_v10, %s1775_s15  ;;  %392 = vrot.lane.b32.xlu0 %v1875_v10, %s1776_s16  ;;  %v1661_v11 = vpop.f32.mrb[1].mxu0  ;;  %s1790_s15 = smov 24  }
  0xee   : > { %v379_v12 = vpop.f32.mrb[2].mxu0 }
  0xef   : > { %v1662_v13 = vpop.f32.mrb[3].mxu0 }
  0xf1   : > { %401 = vrot.lane.b32.xlu1 %v1875_v10, %s1777_s17  ;;  %395 = vrot.lane.b32.xlu0 %v1875_v10, %s1778_s18  ;;  %s297_s18 = scalar_lea.vmem %s2052_s6, %s1855_s30  ;;  %s1602_s30 = sshll.u32 %s2055_s25, 1 }
  0xf5   : > { %386 = vrot.lane.b32.xlu1 %v1875_v10, %s1779_s19  ;;  %383 = vrot.lane.b32.xlu0 %v1875_v10, %s1780_s20 }
  0xf9   : > { %389 = vrot.lane.b32.xlu0 %v1875_v10, %s1781_s21  ;;  %s301_s21 = scalar_lea.vmem %s2053_s7, %s1602_s30 }
 0x15f   : > { %v399_v21 = vpop.permute.xlu1 %398  ;;  %v393_v22 = vpop.permute.xlu0 %392 }
 0x160   : > { %v448_v25 = vcombine.low %v393_v22, %v399_v21  ;;  %v449_v26 = vcombine.high %v393_v22, %v399_v21 }
 0x162   : > { %v456_v32 = vrot.slane %v448_v25, %v1884_v24  ;;  %v463_v33 = vrot.slane %v449_v26, %v1884_v24 }
 0x163   : > { %v402_v27 = vpop.permute.xlu1 %401  ;;  %v396_v28 = vpop.permute.xlu0 %395 }
 0x164   : > { %v464_v29 = vcombine.low %v396_v28, %v402_v27  ;;  %v465_v30 = vcombine.high %v396_v28, %v402_v27 }
 0x166   : > { %v472_v34 = vrot.slane %v464_v29, %v1884_v24  ;;  %v479_v35 = vrot.slane %v465_v30, %v1884_v24 }
 0x167   : > { %v384_v36 = vpop.permute.xlu0 %383  ;;  %v387_v41 = vpop.permute.xlu1 %386 }
 0x168   : > { %v512_v37 = vcombine.low %v456_v32, %v472_v34  ;;  %v513_v38 = vcombine.high %v456_v32, %v472_v34  ;;  %v528_v39 = vcombine.low %v463_v33, %v479_v35  ;;  %v529_v40 = vcombine.high %v463_v33, %v479_v35 }
 0x169   : > { %v416_v46 = vcombine.low %v1875_v10, %v387_v41  ;;  %v417_v47 = vcombine.high %v1875_v10, %v387_v41 }
 0x16a   : > { %v520_v42 = vrot.slane %v512_v37, %v1886_v31  ;;  %v527_v43 = vrot.slane %v513_v38, %v1886_v31  ;;  %v536_v44 = vrot.slane %v528_v39, %v1886_v31  ;;  %v543_v45 = vrot.slane %v529_v40, %v1886_v31 }
 0x16b   : > { %v390_v48 = vpop.permute.xlu0 %389  ;;  %v424_v59 = vrot.slane %v416_v46, %v1884_v24  ;;  %v431_v60 = vrot.slane %v417_v47, %v1884_v24 }
 0x16c   : > { %v1609_v49 = vcombine.low %v520_v42, %v527_v43  ;;  %v1611_v50 = vcombine.high %v520_v42, %v527_v43  ;;  %v1613_v51 = vcombine.low %v536_v44, %v543_v45  ;;  %v1615_v52 = vcombine.high %v536_v44, %v543_v45 }
 0x16d   : > { %v432_v53 = vcombine.low %v384_v36, %v390_v48  ;;  %v433_v54 = vcombine.high %v384_v36, %v390_v48 }
 0x16e   : > { %v635_v55 = vrot.slane %v1609_v49, %v1884_v24  ;;  %v651_v56 = vrot.slane %v1611_v50, %v1884_v24  ;;  %v667_v57 = vrot.slane %v1613_v51, %v1884_v24  ;;  %v683_v58 = vrot.slane %v1615_v52, %v1884_v24 }
 0x16f   : > { %v440_v61 = vrot.slane %v432_v53, %v1884_v24  ;;  %v447_v62 = vrot.slane %v433_v54, %v1884_v24 }
 0x170   : > { %v700_v63 = vcombine.low %v635_v55, %v651_v56  ;;  %v732_v0 = vcombine.low %v667_v57, %v683_v58  ;;  %v701_v9 = vcombine.high %v635_v55, %v651_v56  ;;  %v733_v11 = vcombine.high %v667_v57, %v683_v58  ;;  %v1021_v56 = vld [vmem:[%s293_s26] sm:$0xf] }
 0x171   : > { %v480_v2 = vcombine.low %v424_v59, %v440_v61  ;;  %v481_v3 = vcombine.high %v424_v59, %v440_v61  ;;  %v496_v4 = vcombine.low %v431_v60, %v447_v62  ;;  %v497_v5 = vcombine.high %v431_v60, %v447_v62 }
 0x172   : > { %v708_v6 = vrot.slane %v700_v63, %v1886_v31  ;;  %v740_v7 = vrot.slane %v732_v0, %v1886_v31  ;;  %v715_v25 = vrot.slane %v701_v9, %v1886_v31  ;;  %v747_v26 = vrot.slane %v733_v11, %v1886_v31 }
 0x173   : > { %v488_v12 = vrot.slane %v480_v2, %v1886_v31  ;;  %v495_v13 = vrot.slane %v481_v3, %v1886_v31  ;;  %v504_v14 = vrot.slane %v496_v4, %v1886_v31  ;;  %v511_v15 = vrot.slane %v497_v5, %v1886_v31 }
 0x174   : > { %v752_v16 = vcombine.low %v708_v6, %v740_v7  ;;  %v753_v17 = vcombine.high %v708_v6, %v740_v7  ;;  %v754_v36 = vcombine.low %v715_v25, %v747_v26  ;;  %v755_v37 = vcombine.high %v715_v25, %v747_v26 }
 0x175   : > { %v1608_v18 = vcombine.low %v488_v12, %v495_v13  ;;  %v1610_v19 = vcombine.high %v488_v12, %v495_v13  ;;  %v1612_v20 = vcombine.low %v504_v14, %v511_v15  ;;  %v1614_v21 = vcombine.high %v504_v14, %v511_v15 }
 0x176   : > { %v828_v22 = vpack.c.bf16 %v752_v16, %v752_v16  ;;  %v829_v23 = vpack.c.bf16 %v753_v17, %v753_v17  ;;  %v830_v44 = vpack.c.bf16 %v754_v36, %v754_v36  ;;  %v831_v45 = vpack.c.bf16 %v755_v37, %v755_v37 }
 0x177   : > { %v628_v27 = vrot.slane %v1608_v18, %v1884_v24  ;;  %v644_v28 = vrot.slane %v1610_v19, %v1884_v24  ;;  %v660_v29 = vrot.slane %v1612_v20, %v1884_v24  ;;  %v676_v30 = vrot.slane %v1614_v21, %v1884_v24 }
 0x178   : > { %v841_v32 = vsel %vm836_vm2, %v828_v22, 0  ;;  %v887_v33 = vsel %vm836_vm2, %v829_v23, 0  ;;  %v933_v50 = vsel %vm836_vm2, %v830_v44, 0  ;;  %v979_v51 = vsel %vm836_vm2, %v831_v45, 0 }
 0x179   : > { %1664 = vmatpush3.bf16.xpose.msra.mxu1 %v841_v32  ;;  %1670 = vmatpush3.bf16.xpose.msra.mxu0 %v887_v33  ;;  %v684_v34 = vcombine.low %v628_v27, %v644_v28  ;;  %v716_v35 = vcombine.low %v660_v29, %v676_v30  ;;  %v685_v39 = vcombine.high %v628_v27, %v644_v28  ;;  %v1022_v57 = vunpack.c.l.bf16 %v1021_v56 }
 0x17a   : > { %1675 = vmatprep.subr.bf16.mxu1 %v1773_v1  ;;  %1681 = vmatprep.subr.bf16.mxu0 %v1773_v1  ;;  %v717_v40 = vcombine.high %v660_v29, %v676_v30 }
 0x17b   : > { %v692_v38 = vrot.slane %v684_v34, %v1886_v31  ;;  %v724_v41 = vrot.slane %v716_v35, %v1886_v31  ;;  %v699_v48 = vrot.slane %v685_v39, %v1886_v31 }
 0x17c   : > { %v731_v49 = vrot.slane %v717_v40, %v1886_v31 }
 0x17d   : > { %v748_v42 = vcombine.low %v692_v38, %v724_v41  ;;  %v749_v43 = vcombine.high %v692_v38, %v724_v41 }
 0x17e   : > { %v750_v52 = vcombine.low %v699_v48, %v731_v49  ;;  %v751_v53 = vcombine.high %v699_v48, %v731_v49 }
 0x17f   : > { %v824_v46 = vpack.c.bf16 %v748_v42, %v748_v42  ;;  %v825_v47 = vpack.c.bf16 %v749_v43, %v749_v43 }
 0x180   : > { %v826_v54 = vpack.c.bf16 %v750_v52, %v750_v52  ;;  %v827_v55 = vpack.c.bf16 %v751_v53, %v751_v53 }
 0x181   : > { %1666 = vmatmul.mubr.msk.bf16.vlgmr.msra.gmra.mrb[0].mxu1 %vm836_vm2, %v824_v46  ;;  %1672 = vmatmul.mubr.msk.bf16.vlgmr.msra.gmra.mrb[4].mxu0 %vm836_vm2, %v825_v47 }
 0x182   : > { %1676 = vmatpush3.bf16.xpose.msra.mxu1 %v933_v50  ;;  %1682 = vmatpush3.bf16.xpose.msra.mxu0 %v979_v51 }
 0x183   : > { %1677 = vmatprep.mubr.msk.bf16.mxu1 %vm1774_vm0, %v1773_v1  ;;  %1683 = vmatprep.mubr.msk.bf16.mxu0 %vm1774_vm0, %v1773_v1 }
 0x184   : > { %1687 = vmatprep.subr.bf16.mxu1 %v1773_v1  ;;  %1693 = vmatprep.subr.bf16.mxu0 %v1773_v1 }
 0x189   : > { %1678 = vmatmul.mubr.msk.bf16.vlgmr.msra.gmra.mrb[4].mxu1 %vm836_vm2, %v826_v54  ;;  %1684 = vmatmul.mubr.msk.bf16.vlgmr.msra.gmra.mrb[8].mxu0 %vm836_vm2, %v827_v55 }
 0x18a   : > { %1689 = vmatprep.mubr.msk.bf16.mxu1 %vm1774_vm0, %v1773_v1  ;;  %1695 = vmatprep.mubr.msk.bf16.mxu0 %vm1774_vm0, %v1773_v1 }
 0x254   : > { %v877_v58 = vpop.f32.mrb[0].mxu1  ;;  %v923_v59 = vpop.f32.mrb[4].mxu0 }
 0x255   : > { %v1023_v60 = vadd.f32 %v1022_v57, %v877_v58  ;;  %v1024_v61 = vadd.f32 %v1022_v57, %v923_v59  ;;  %v1667_v62 = vpop.f32.mrb[1].mxu1  ;;  %v1673_v63 = vpop.f32.mrb[5].mxu0 }
 0x256   : > { %v880_v0 = vpop.f32.mrb[2].mxu1  ;;  %v926_v2 = vpop.f32.mrb[6].mxu0 }
 0x257   : > { %v1668_v3 = vpop.f32.mrb[3].mxu1  ;;  %v1674_v4 = vpop.f32.mrb[7].mxu0  ;;  %v1027_v5 = vsel %vm836_vm2, %v1023_v60, -inf  ;;  %v1030_v6 = vsel %vm836_vm2, %v1024_v61, -inf }
 0x258   : > { %1028 = vmax.xlane.f32.xlu1 %v1027_v5  ;;  %1031 = vmax.xlane.f32.xlu0 %v1030_v6 }
 0x25c   : > { %v969_v7 = vpop.f32.mrb[4].mxu1  ;;  %v1015_v9 = vpop.f32.mrb[8].mxu0 }
 0x25d   : > { %v1025_v11 = vadd.f32 %v1022_v57, %v969_v7  ;;  %v1026_v12 = vadd.f32 %v1022_v57, %v1015_v9  ;;  %v1679_v13 = vpop.f32.mrb[5].mxu1  ;;  %v1685_v14 = vpop.f32.mrb[9].mxu0 }
 0x25e   : > { %v972_v15 = vpop.f32.mrb[6].mxu1  ;;  %v1018_v16 = vpop.f32.mrb[10].mxu0 }
 0x25f   : > { %v1680_v17 = vpop.f32.mrb[7].mxu1  ;;  %v1686_v18 = vpop.f32.mrb[11].mxu0  ;;  %v1033_v19 = vsel %vm836_vm2, %v1025_v11, -inf  ;;  %v1036_v20 = vsel %vm836_vm2, %v1026_v12, -inf }
 0x260   : > { %1034 = vmax.xlane.f32.xlu0 %v1033_v19  ;;  %1037 = vmax.xlane.f32.xlu1 %v1036_v20 }
 0x271   : > { %407 = vrot.lane.b32.xlu1 %v1875_v10, %s1784_s27 }
 0x276   : > { %404 = vrot.lane.b32.xlu0 %v1875_v10, %s1785_s28 }
 0x2e5   : > { %v1029_v21 = vpop.xlane.xlu1 %1028  ;;  %v1032_v22 = vpop.xlane.xlu0 %1031 }
 0x2e6   : > { %v1039_v23 = vsub.f32 %v1023_v60, %v1029_v21  ;;  %v1040_v25 = vsub.f32 %v1024_v61, %v1032_v22 }
 0x2e8   : > { %v1043_v26 = vmul.f32 1.442695, %v1039_v23  ;;  %v1045_v27 = vmul.f32 1.442695, %v1040_v25 }
 0x2ea   : > { %1749 = vpow2.f32 %v1043_v26 }
 0x2eb   : > { %1751 = vpow2.f32 %v1045_v27 }
 0x2ed   : > { %v1038_v33 = vpop.xlane.xlu1 %1037  ;;  %v1035_v34 = vpop.xlane.xlu0 %1034 }
 0x2ee   : > { %v1042_v35 = vsub.f32 %v1026_v12, %v1038_v33  ;;  %v1041_v36 = vsub.f32 %v1025_v11, %v1035_v34 }
 0x2f0   : > { %v1049_v37 = vmul.f32 1.442695, %v1042_v35  ;;  %v1047_v38 = vmul.f32 1.442695, %v1041_v36 }
 0x2f1   : > { %v408_v43 = vpop.permute.xlu1 %407 }
 0x2f2   : > { %1753 = vpow2.f32 %v1049_v37 }
 0x2f3   : > { %1755 = vpow2.f32 %v1047_v38 }
 0x2f4   : > { %v1952_v28 = vpop.eup %1749 }
 0x2f5   : > { %v1954_v29 = vpop.eup %1751  ;;  %v1051_v30 = vsel %vm836_vm2, %v1952_v28, 0.0 }
 0x2f6   : > { %1052 = vadd.xlane.f32.xlu0 %v1051_v30  ;;  %v1054_v32 = vsel %vm836_vm2, %v1954_v29, 0.0 }
 0x2f7   : > { %1055 = vadd.xlane.f32.xlu1 %v1054_v32 }
 0x2fc   : > { %v1962_v39 = vpop.eup %1753 }
 0x2fd   : > { %v1964_v40 = vpop.eup %1755  ;;  %v1060_v41 = vsel %vm836_vm2, %v1962_v39, 0.0 }
 0x2fe   : > { %v1057_v42 = vsel %vm836_vm2, %v1964_v40, 0.0 }
 0x308   : > { %410 = vrot.lane.b32.xlu1 %v1875_v10, %s1786_s29 }
 0x30c   : > { %413 = vrot.lane.b32.xlu0 %v1875_v10, %s1787_s8  ;;  %v405_v10 = vpop.permute.xlu0 %404 }
 0x32b   : > { %1061 = vadd.xlane.f32.xlu0 %v1060_v41 }
 0x32c   : > { %1058 = vadd.xlane.f32.xlu1 %v1057_v42 }
 0x383   : > { %v1053_v44 = vpop.xlane.xlu0 %1052 }
 0x384   : > { %v1056_v45 = vpop.xlane.xlu1 %1055  ;;  %1757 = vrcp.f32 %v1053_v44 }
 0x385   : > { %1759 = vrcp.f32 %v1056_v45 }
 0x387   : > { %v414_v46 = vpop.permute.xlu0 %413 }
 0x388   : > { %v568_v47 = vcombine.low %v408_v43, %v414_v46  ;;  %v569_v48 = vcombine.high %v408_v43, %v414_v46  ;;  %v411_v49 = vpop.permute.xlu1 %410 }
 0x389   : > { %v552_v50 = vcombine.low %v405_v10, %v411_v49  ;;  %v553_v51 = vcombine.high %v405_v10, %v411_v49 }
 0x38a   : > { %v576_v52 = vrot.slane %v568_v47, %v1884_v24  ;;  %v583_v53 = vrot.slane %v569_v48, %v1884_v24 }
 0x38b   : > { %v560_v54 = vrot.slane %v552_v50, %v1884_v24  ;;  %v567_v55 = vrot.slane %v553_v51, %v1884_v24 }
 0x38d   : > { %v584_v56 = vcombine.low %v560_v54, %v576_v52  ;;  %v585_v57 = vcombine.high %v560_v54, %v576_v52  ;;  %v600_v58 = vcombine.low %v567_v55, %v583_v53  ;;  %v601_v59 = vcombine.high %v567_v55, %v583_v53 }
 0x38e   : > { %v1758_v17 = vpop.eup %1757 }
 0x38f   : > { %v592_v60 = vrot.slane %v584_v56, %v1886_v31  ;;  %v599_v61 = vrot.slane %v585_v57, %v1886_v31  ;;  %v608_v62 = vrot.slane %v600_v58, %v1886_v31  ;;  %v615_v63 = vrot.slane %v601_v59, %v1886_v31  ;;  %v1760_v20 = vpop.eup %1759 }
 0x390   : > { %v1064_v26 = vmul.f32 %v1758_v17, %v1952_v28  ;;  %v1066_v27 = vmul.f32 %v1760_v20, %v1954_v29 }
 0x391   : > { %v756_v0 = vcombine.low %v592_v60, %v599_v61  ;;  %v1616_v2 = vcombine.high %v592_v60, %v599_v61  ;;  %v772_v3 = vcombine.low %v608_v62, %v615_v63  ;;  %v1617_v4 = vcombine.high %v608_v62, %v615_v63 }
 0x392   : > { %v1071_v37 = vpack.c.bf16 %v1064_v26, %v1064_v26  ;;  %v1072_v38 = vpack.c.bf16 %v1066_v27, %v1066_v27 }
 0x393   : > { %v763_v5 = vrot.slane %v756_v0, %v1884_v24  ;;  %v771_v6 = vrot.slane %v1616_v2, %v1884_v24  ;;  %v779_v7 = vrot.slane %v772_v3, %v1884_v24  ;;  %v787_v9 = vrot.slane %v1617_v4, %v1884_v24 }
 0x395   : > { %v788_v11 = vcombine.low %v763_v5, %v771_v6  ;;  %v789_v12 = vcombine.high %v763_v5, %v771_v6  ;;  %v804_v13 = vcombine.low %v779_v7, %v787_v9  ;;  %v805_v14 = vcombine.high %v779_v7, %v787_v9 }
 0x397   : > { %v796_v15 = vrot.slane %v788_v11, %v1886_v31  ;;  %v803_v16 = vrot.slane %v789_v12, %v1886_v31  ;;  %v812_v18 = vrot.slane %v804_v13, %v1886_v31  ;;  %v819_v19 = vrot.slane %v805_v14, %v1886_v31  ;;  %v1747_v13 = vld [vmem:[%s2051_s5] sm:$0xff]  }
 0x399   : > { %v820_v21 = vcombine.low %v796_v15, %v812_v18  ;;  %v821_v22 = vcombine.high %v796_v15, %v812_v18  ;;  %v822_v23 = vcombine.low %v803_v16, %v819_v19  ;;  %v823_v25 = vcombine.high %v803_v16, %v819_v19 }
 0x39b   : > { %v832_v30 = vpack.c.bf16 %v820_v21, %v820_v21  ;;  %v833_v32 = vpack.c.bf16 %v821_v22, %v821_v22  ;;  %v834_v35 = vpack.c.bf16 %v822_v23, %v822_v23  ;;  %v835_v36 = vpack.c.bf16 %v823_v25, %v823_v25  ;;  %v1748_v22 = vld [vmem:[%s2051_s5 + $0x8] sm:$0xff]  }
 0x39d   : > { %v1080_v33 = vsel %vm1078_vm3, %v832_v30, 0  ;;  %v1126_v34 = vsel %vm1078_vm3, %v833_v32, 0  ;;  %v1172_v28 = vsel %vm1078_vm3, %v834_v35, 0  ;;  %v1218_v29 = vsel %vm1078_vm3, %v835_v36, 0 }
 0x39e   : > { %1688 = vmatpush3.bf16.msra.mxu1 %v1080_v33  ;;  %1694 = vmatpush3.bf16.msra.mxu0 %v1126_v34 }
 0x39f   : > { %1699 = vmatprep.subr.bf16.mxu1 %v1773_v1  ;;  %1705 = vmatprep.subr.bf16.mxu0 %v1773_v1 }
 0x3a1   : > { %1690 = vmatmul.mubr.msk.bf16.vlgmr.msra.gmra.mrb[8].mxu1 %vm836_vm2, %v1071_v37  ;;  %1696 = vmatmul.mubr.msk.bf16.vlgmr.msra.gmra.mrb[12].mxu0 %vm836_vm2, %v1072_v38 }
 0x3a2   : > { %1700 = vmatpush3.bf16.msra.mxu1 %v1172_v28  ;;  %1706 = vmatpush3.bf16.msra.mxu0 %v1218_v29 }
 0x3a3   : > { %1701 = vmatprep.mubr.msk.bf16.mxu1 %vm1774_vm0, %v1773_v1  ;;  %1707 = vmatprep.mubr.msk.bf16.mxu0 %vm1774_vm0, %v1773_v1 }
 0x3a4   : > { %1711 = vmatprep.subr.bf16.mxu1 %v1773_v1 }
 0x3b8   : > { %v1062_v41 = vpop.xlane.xlu0 %1061 }
 0x3b9   : > { %1761 = vrcp.f32 %v1062_v41  ;;  %v1059_v42 = vpop.xlane.xlu1 %1058 }
 0x3ba   : > { %1763 = vrcp.f32 %v1059_v42 }
 0x3c3   : > { %v1762_v10 = vpop.eup %1761 }
 0x3c4   : > { %v1764_v43 = vpop.eup %1763  ;;  %v1070_v44 = vmul.f32 %v1762_v10, %v1962_v39 }
 0x3c5   : > { %v1068_v45 = vmul.f32 %v1764_v43, %v1964_v40 }
 0x3c6   : > { %v1074_v46 = vpack.c.bf16 %v1070_v44, %v1070_v44 }
 0x3c7   : > { %v1073_v47 = vpack.c.bf16 %v1068_v45, %v1068_v45 }
 0x3c8   : > { %1708 = vmatmul.mubr.msk.bf16.vlgmr.msra.gmra.mrb[16].mxu0 %vm836_vm2, %v1074_v46 }
 0x3c9   : > { %1702 = vmatmul.mubr.msk.bf16.vlgmr.msra.gmra.mrb[12].mxu1 %vm836_vm2, %v1073_v47 }
 0x3ca   : > { %1715 = vmatprep.mubr.msk.bf16.mxu1 %vm1774_vm0, %v1773_v1  ;;  %1712 = vmatpush3.bf16.msra.mxu1 %v1747_v13 }
 0x3cb   : > { %1713 = vmatprep.subr.bf16.mxu1 %v1773_v1 }
 0x3ce   : > { %1714 = vmatpush3.bf16.msra.mxu1 %v1748_v22 }
 0x474   : > { %v1116_v48 = vpop.f32.mrb[8].mxu1  ;;  %v1162_v49 = vpop.f32.mrb[12].mxu0 }
 0x475   : > { %v1691_v50 = vpop.f32.mrb[9].mxu1  ;;  %v1697_v51 = vpop.f32.mrb[13].mxu0 }
 0x476   : > { %v1119_v52 = vpop.f32.mrb[10].mxu1  ;;  %v1165_v53 = vpop.f32.mrb[14].mxu0 }
 0x477   : > { %v1692_v54 = vpop.f32.mrb[11].mxu1  ;;  %v1698_v55 = vpop.f32.mrb[15].mxu0 }
 0x49b   : > { %v1254_v39 = vpop.f32.mrb[16].mxu0 }
 0x49c   : > { %v1208_v56 = vpop.f32.mrb[12].mxu1  ;;  %v1276_v40 = vcombine.low %v1162_v49, %v1254_v39  ;;  %v1277_v57 = vcombine.high %v1162_v49, %v1254_v39  ;;  %v1709_v58 = vpop.f32.mrb[17].mxu0 }
 0x49d   : > { %v1260_v59 = vcombine.low %v1116_v48, %v1208_v56  ;;  %v1261_v60 = vcombine.high %v1116_v48, %v1208_v56  ;;  %v1703_v61 = vpop.f32.mrb[13].mxu1  ;;  %v1257_v62 = vpop.f32.mrb[18].mxu0 }
 0x49e   : > { %v1284_v63 = vrot.slane %v1276_v40, %v1884_v24  ;;  %v1291_v0 = vrot.slane %v1277_v57, %v1884_v24  ;;  %v1211_v2 = vpop.f32.mrb[14].mxu1  ;;  %v1710_v3 = vpop.f32.mrb[19].mxu0 }
 0x49f   : > { %v1268_v4 = vrot.slane %v1260_v59, %v1884_v24  ;;  %v1275_v5 = vrot.slane %v1261_v60, %v1884_v24  ;;  %v1704_v6 = vpop.f32.mrb[15].mxu1 }
 0x4a1   : > { %v1292_v7 = vcombine.low %v1268_v4, %v1284_v63  ;;  %v1293_v9 = vcombine.high %v1268_v4, %v1284_v63  ;;  %v1308_v11 = vcombine.low %v1275_v5, %v1291_v0  ;;  %v1309_v12 = vcombine.high %v1275_v5, %v1291_v0 }
 0x4a3   : > { %v1300_v14 = vrot.slane %v1292_v7, %v1886_v31  ;;  %v1307_v15 = vrot.slane %v1293_v9, %v1886_v31  ;;  %v1316_v16 = vrot.slane %v1308_v11, %v1886_v31  ;;  %v1323_v17 = vrot.slane %v1309_v12, %v1886_v31 }
 0x4a5   : > { %v1328_v18 = vcombine.low %v1300_v14, %v1307_v15  ;;  %v1626_v19 = vcombine.high %v1300_v14, %v1307_v15  ;;  %v1344_v20 = vcombine.low %v1316_v16, %v1323_v17  ;;  %v1627_v21 = vcombine.high %v1316_v16, %v1323_v17 }
 0x4a7   : > { %v1335_v23 = vrot.slane %v1328_v18, %v1884_v24  ;;  %v1343_v25 = vrot.slane %v1626_v19, %v1884_v24  ;;  %v1351_v26 = vrot.slane %v1344_v20, %v1884_v24  ;;  %v1359_v27 = vrot.slane %v1627_v21, %v1884_v24 }
 0x4a9   : > { %v1361_v30 = vcombine.high %v1335_v23, %v1343_v25  ;;  %v1377_v32 = vcombine.high %v1351_v26, %v1359_v27  ;;  %v1360_v1 = vcombine.low %v1335_v23, %v1343_v25  ;;  %v1376_v33 = vcombine.low %v1351_v26, %v1359_v27 }
 0x4ab   : > { %v1375_v34 = vrot.slane %v1361_v30, %v1886_v31  ;;  %v1391_v35 = vrot.slane %v1377_v32, %v1886_v31  ;;  %v1368_v36 = vrot.slane %v1360_v1, %v1886_v31  ;;  %v1384_v37 = vrot.slane %v1376_v33, %v1886_v31 }
 0x4ad   : > { %v1394_v38 = vcombine.low %v1375_v34, %v1391_v35  ;;  %v1393_v28 = vcombine.high %v1368_v36, %v1384_v37  ;;  %v1395_v29 = vcombine.high %v1375_v34, %v1391_v35  ;;  %v1392_v41 = vcombine.low %v1368_v36, %v1384_v37 }
 0x4af   : > { %1401 = vrot.lane.b32.xlu1 %v1394_v38, %s1788_s13  ;;  %1397 = vrot.lane.b32.xlu0 %v1393_v28, %s1789_s14 }
 0x4b3   : > { %1405 = vrot.lane.b32.xlu1 %v1395_v29, %s1790_s15 }
 0x521   : > { %v1402_v24 = vpop.permute.xlu1 %1401  ;;  %v1398_v42 = vpop.permute.xlu0 %1397 }
 0x522   : > { %v1408_v10 = vsel %vm836_vm2, %v1392_v41, %v1398_v42 }
 0x523   : > { %v1410_v44 = vsel %vm1409_vm4, %v1408_v10, %v1402_v24 }
 0x525   : > { %v1406_v43 = vpop.permute.xlu1 %1405 }
 0x526   : > { %v1412_v31 = vsel %vm1411_vm5, %v1410_v44, %v1406_v43 }
 0x527   : > { %v1413_v45 = vpack.c.bf16 %v1412_v31, %v1412_v31 }
 0x529   : > { %1716 = vmatmul.mubr.msk.bf16.vlgmr.msra.gmra.mrb[16].mxu1 %vm338_vm1, %v1413_v45 }
 0x5fc   : > { %v1467_v46 = vpop.f32.mrb[16].mxu1 }
 0x5fd   : > { %v1473_v47 = vadd.f32 %v1467_v46, %v1868_v8  ;;  %v1717_v48 = vpop.f32.mrb[17].mxu1 }
 0x5fe   : > { %v1470_v49 = vpop.f32.mrb[18].mxu1 }
 0x5ff   : > { %v1474_v50 = vpack.c.bf16 %v1473_v47, %v1473_v47  ;;  %v1477_v51 = vsel %vm338_vm1, %v1473_v47, 0.0  ;;  %v1718_v52 = vpop.f32.mrb[19].mxu1 }
 0x600   : > { %v1478_v53 = vrot.slane %v1477_v51, 4 }
 0x601   : > { %1476 = vst.msk [vmem:[%s297_s18] sm:$0xf] %vm1475_vm6, %v1474_v50 }
 0x602   : > { %v1479_v54 = vadd.f32 %v1478_v53, %v1477_v51 }
 0x604   : > { %v1480_v55 = vrot.slane %v1479_v54, 2 }
 0x606   : > { %v1481_v39 = vadd.f32 %v1480_v55, %v1479_v54 }
 0x608   : > { %v1482_v56 = vrot.slane %v1481_v39, 1 }
 0x60a   : > { %v1483_v40 = vadd.f32 %v1482_v56, %v1481_v39 }
 0x60c   : > { %v1484_v8 = vmul.f32 0.125, %v1483_v40 }
 0x60e   : > { %v1485_v57 = vsub.f32 %v1473_v47, %v1484_v8 }
 0x610   : > { %v1486_v58 = vmul.f32 %v1485_v57, %v1485_v57 }
 0x612   : > { %v1487_v59 = vsel %vm338_vm1, %v1486_v58, 0.0 }
 0x613   : > { %v1488_v60 = vrot.slane %v1487_v59, 4 }
 0x615   : > { %v1489_v61 = vadd.f32 %v1488_v60, %v1487_v59 }
 0x617   : > { %v1490_v62 = vrot.slane %v1489_v61, 2 }
 0x619   : > { %v1491_v63 = vadd.f32 %v1490_v62, %v1489_v61 }
 0x61b   : > { %v1492_v0 = vrot.slane %v1491_v63, 1 }
 0x61d   : > { %v1493_v2 = vadd.f32 %v1492_v0, %v1491_v63 }
 0x61f   : > { %v1495_v3 = vsel %vm1494_vm7, %v1483_v40, %v1493_v2 }
 0x620   : > { %1497 = vst.msk [vmem:[%s301_s21] sm:$0x3] %vm1496_vm8, %v1495_v3 }
 0x621 PF: > { %s18_s24 = sadd.s32 1, %s1771_s24  }
 0x622   : > { %p15_p4 = scmp.ge.s32.totalorder %s18_s24, 4  }
 0x624   :  { %17 = sbr.rel (!%p15_p4) target bundleno = 1 (0x1), region = 89 }

</bundles_post_ra>
